<compile_context>
chip_gen: v5e
topology: v5e:2x2
jax: 0.10.0
libtpu: 0.0.40
codegen_flags: <defaults>
</compile_context>

<pallas_src>
import math
import functools

import numpy as np
import jax
import jax.numpy as jnp
from jax.experimental import pallas as pl
from jax.experimental.pallas import tpu as pltpu

LANE = 128
NEG_INF = -1e9


def _round_up(n, m):
  return ((n + m - 1) // m) * m


def _decoder_layer_kernel(
    lens_ref,                                   # SMEM (B,) int32 (scalar prefetch)
    xpad_ref, cross_ref, bias_ref,
    w1_ref, b1_ref, wqk_ref, bqk_ref, wv_ref, bv_ref, wow2_ref, w2_ref, bf_ref,
    o_ref,
    *, T, dkp, dilation, eps):
  length = lens_ref[pl.program_id(0)]           # valid frames for this batch elem
  xpad = xpad_ref[0]                            # (T + 2*dilation, Cp)  f32
  cross = cross_ref[0]                          # (T, Cp)               f32
  x = xpad[dilation:dilation + T, :]            # original (channel-padded) input

  # ---- conv1 (dilated, k=3) + ReLU: one fused MXU matmul over all 3 taps ----
  taps = jnp.concatenate(
      [xpad[tap * dilation:tap * dilation + T, :] for tap in range(3)],
      axis=1).astype(jnp.bfloat16)              # (T, 3*Cp)
  feat = jnp.dot(taps, w1_ref[...], preferred_element_type=jnp.float32) + b1_ref[...]
  feat = jnp.maximum(feat, 0.0)
  residual = feat

  # ---- InstanceNorm1d (affine=False): normalize over time, per channel ----
  mean = jnp.mean(feat, axis=0, keepdims=True)
  var = jnp.mean(jnp.square(feat - mean), axis=0, keepdims=True)
  normed = (feat - mean) * jax.lax.rsqrt(var + eps)

  # ---- local windowed attention (h=1): q,k from normed, v from cross -------
  qk = jnp.dot(normed.astype(jnp.bfloat16), wqk_ref[...],
               preferred_element_type=jnp.float32) + bqk_ref[...]
  q = qk[:, :dkp]                               # 1/sqrt(dk) already folded in
  kx = qk[:, dkp:]
  v = jnp.dot(cross.astype(jnp.bfloat16), wv_ref[...],
              preferred_element_type=jnp.float32) + bv_ref[...]

  scores = jax.lax.dot_general(
      q.astype(jnp.bfloat16), kx.astype(jnp.bfloat16),
      (((1,), (1,)), ((), ())), preferred_element_type=jnp.float32)   # (T, T)

  col_ids = jax.lax.broadcasted_iota(jnp.int32, (1, T), 1)
  key_bias = jnp.where(col_ids < length, 0.0, NEG_INF)    # dynamic key-pad mask
  scores = scores + bias_ref[...] + key_bias               # static band/segment bias

  m = jnp.max(scores, axis=-1, keepdims=True)
  p = jnp.exp(scores - m)
  attn = p * pl.reciprocal(jnp.sum(p, axis=-1, keepdims=True), approx=True)
  ctx = jnp.dot(attn.astype(jnp.bfloat16), v.astype(jnp.bfloat16),
                preferred_element_type=jnp.float32)        # (T, dkp)

  # ---- (alpha*attn_out + residual) @ W2 + b2, with alpha*Wo@W2 pre-folded ---
  out = (jnp.dot(ctx.astype(jnp.bfloat16), wow2_ref[...],
                 preferred_element_type=jnp.float32)
         + jnp.dot(residual.astype(jnp.bfloat16), w2_ref[...],
                   preferred_element_type=jnp.float32)
         + bf_ref[...])

  row_ids = jax.lax.broadcasted_iota(jnp.int32, (T, 1), 0)
  row_mask = jnp.where(row_ids < length, 1.0, 0.0)
  o_ref[0] = (x + out) * row_mask


def decoder_layer(x, cross, input_mask, params, *, l_seg, dilation, alpha, eps=1e-5):
  """x, cross: (B, C, T) PyTorch layout; input_mask: (B, T) contiguous-prefix
  padding mask in {0,1}.  Returns (B, C, T).  Eval-mode forward."""
  B, C, T = x.shape
  dk = C // 2
  window = 2 * (dilation // 2) + 1
  Cp = _round_up(C, LANE)
  dkp = _round_up(dk, LANE)
  Tlen = T + 2 * dilation
  f32, bf16 = jnp.float32, jnp.bfloat16
  scale = 1.0 / math.sqrt(dk)

  # ---- lane-dense activations: (B, T, Cp), zero-padded channels + conv halo ----
  xt = jnp.transpose(x, (0, 2, 1)).astype(f32)
  crosst = jnp.transpose(cross, (0, 2, 1)).astype(f32)
  xpad = jnp.pad(xt, ((0, 0), (dilation, dilation), (0, Cp - C)))
  crossp = jnp.pad(crosst, ((0, 0), (0, 0), (0, Cp - C)))

  # contiguous-prefix mask -> per-batch valid length (scalar prefetch, SMEM)
  lengths = jnp.sum((input_mask > 0).astype(jnp.int32), axis=1).astype(jnp.int32)

  # ---- static window/segment additive bias, hoisted out of the kernel ----
  idx = np.arange(T)
  allowed = ((np.abs(idx[:, None] - idx[None, :]) <= (window // 2)) &
             ((idx[:, None] // l_seg) == (idx[None, :] // l_seg)))
  static_bias = jnp.asarray(np.where(allowed, 0.0, NEG_INF).astype(np.float32))

  # ---- weight padding / folding / bf16 casting (cache these in a real model) ----
  w1p = jnp.pad(params["w1"].astype(f32), ((0, 0), (0, Cp - C), (0, Cp - C)))
  w1f = jnp.reshape(w1p, (3 * Cp, Cp)).astype(bf16)                     # (3Cp, Cp)
  b1 = jnp.pad(params["b1"].astype(f32), ((0, 0), (0, Cp - C)))

  wq = jnp.pad(params["wq"].astype(f32) * scale, ((0, Cp - C), (0, dkp - dk)))
  wk = jnp.pad(params["wk"].astype(f32), ((0, Cp - C), (0, dkp - dk)))
  wqk = jnp.concatenate([wq, wk], axis=1).astype(bf16)                  # (Cp, 2dkp)
  bq = jnp.pad(params["bq"].astype(f32) * scale, ((0, 0), (0, dkp - dk)))
  bk = jnp.pad(params["bk"].astype(f32), ((0, 0), (0, dkp - dk)))
  bqk = jnp.concatenate([bq, bk], axis=1)                               # (1, 2dkp)

  wv = jnp.pad(params["wv"].astype(f32), ((0, Cp - C), (0, dkp - dk))).astype(bf16)
  bv = jnp.pad(params["bv"].astype(f32), ((0, 0), (0, dkp - dk)))

  wow2 = jnp.pad(alpha * (params["wo"].astype(f32) @ params["w2"].astype(f32)),
                 ((0, dkp - dk), (0, Cp - C))).astype(bf16)             # (dkp, Cp)
  w2 = jnp.pad(params["w2"].astype(f32), ((0, Cp - C), (0, Cp - C))).astype(bf16)
  bfuse = jnp.pad(alpha * (params["bo"].astype(f32) @ params["w2"].astype(f32))
                  + params["b2"].astype(f32), ((0, 0), (0, Cp - C)))

  kernel = functools.partial(_decoder_layer_kernel, T=T, dkp=dkp,
                             dilation=dilation, eps=eps)

  bmap3 = lambda b, lens: (b, 0, 0)   # per-batch 3-D blocks
  rep2 = lambda b, lens: (0, 0)       # replicated 2-D params

  out_btc = pl.pallas_call(
      kernel,
      out_shape=jax.ShapeDtypeStruct((B, T, Cp), f32),
      grid_spec=pltpu.PrefetchScalarGridSpec(
          num_scalar_prefetch=1,
          grid=(B,),
          in_specs=[
              pl.BlockSpec((1, Tlen, Cp), bmap3),   # xpad
              pl.BlockSpec((1, T, Cp), bmap3),      # cross
              pl.BlockSpec((T, T), rep2),           # static attention bias
              pl.BlockSpec((3 * Cp, Cp), rep2),     # fused conv1 weight
              pl.BlockSpec((1, Cp), rep2),          # conv1 bias
              pl.BlockSpec((Cp, 2 * dkp), rep2),    # fused Wq|Wk (scale folded)
              pl.BlockSpec((1, 2 * dkp), rep2),     # fused bq|bk
              pl.BlockSpec((Cp, dkp), rep2),        # Wv
              pl.BlockSpec((1, dkp), rep2),         # bv
              pl.BlockSpec((dkp, Cp), rep2),        # alpha * Wo @ W2
              pl.BlockSpec((Cp, Cp), rep2),         # W2 (1x1 conv2)
              pl.BlockSpec((1, Cp), rep2),          # fused bias
          ],
          out_specs=pl.BlockSpec((1, T, Cp), bmap3)),
      compiler_params=pltpu.CompilerParams(
          dimension_semantics=("parallel",)),
  )(lengths, xpad, crossp, static_bias,
    w1f, b1, wqk, bqk, wv, bv, wow2, w2, bfuse)

  return jnp.transpose(out_btc[:, :, :C], (0, 2, 1))       # back to (B, C, T)


def decoder_layer_reference(x, cross, input_mask, p, *, l_seg, dilation, alpha, eps=1e-5):
  """Pure-JAX f32 reference with the module's math (for correctness check)."""
  B, C, T = x.shape
  dk = C // 2
  window = 2 * (dilation // 2) + 1
  xt = jnp.transpose(x, (0, 2, 1)).astype(jnp.float32)
  crosst = jnp.transpose(cross, (0, 2, 1)).astype(jnp.float32)
  xpad = jnp.pad(xt, ((0, 0), (dilation, dilation), (0, 0)))
  feat = jnp.zeros((B, T, C), jnp.float32) + p["b1"]
  for k in range(3):
    feat = feat + jnp.einsum("bti,io->bto",
                             xpad[:, k * dilation:k * dilation + T, :], p["w1"][k])
  feat = jnp.maximum(feat, 0.0)
  residual = feat
  mean = feat.mean(axis=1, keepdims=True)
  var = ((feat - mean) ** 2).mean(axis=1, keepdims=True)
  normed = (feat - mean) / jnp.sqrt(var + eps)
  q = normed @ p["wq"] + p["bq"]
  kk = normed @ p["wk"] + p["bk"]
  v = crosst @ p["wv"] + p["bv"]
  scores = jnp.einsum("bqd,bkd->bqk", q, kk) / math.sqrt(dk)
  idx = jnp.arange(T)
  win = jnp.abs(idx[:, None] - idx[None, :]) <= (window // 2)
  seg = (idx[:, None] // l_seg) == (idx[None, :] // l_seg)
  key_ok = input_mask[:, None, :] > 0
  allowed = win[None] & seg[None] & key_ok
  scores = jnp.where(allowed, scores, -1e9)
  attn = jax.nn.softmax(scores, axis=-1)
  ctx = jnp.einsum("bqk,bkd->bqd", attn, v)
  att_out = ctx @ p["wo"] + p["bo"]
  out = alpha * att_out + residual
  out = out @ p["w2"] + p["b2"]
  out = (xt + out) * input_mask.astype(jnp.float32)[:, :, None]
  return jnp.transpose(out, (0, 2, 1))


def init_params(key, d_model):
  C = d_model
  dk = C // 2
  ks = jax.random.split(key, 12)
  n = jax.random.normal
  return {
      "w1": n(ks[0], (3, C, C), jnp.float32) / math.sqrt(3 * C),
      "b1": n(ks[1], (1, C), jnp.float32) * 0.1,
      "wq": n(ks[2], (C, dk), jnp.float32) / math.sqrt(C),
      "bq": n(ks[3], (1, dk), jnp.float32) * 0.1,
      "wk": n(ks[4], (C, dk), jnp.float32) / math.sqrt(C),
      "bk": n(ks[5], (1, dk), jnp.float32) * 0.1,
      "wv": n(ks[6], (C, dk), jnp.float32) / math.sqrt(C),
      "bv": n(ks[7], (1, dk), jnp.float32) * 0.1,
      "wo": n(ks[8], (dk, C), jnp.float32) / math.sqrt(dk),
      "bo": n(ks[9], (1, C), jnp.float32) * 0.1,
      "w2": n(ks[10], (C, C), jnp.float32) / math.sqrt(C),
      "b2": n(ks[11], (1, C), jnp.float32) * 0.1,
  }


if __name__ == "__main__":
  B, d_model, T = 2, 32, 64
  l_seg, dilation, alpha = 16, 2, 0.5

  key = jax.random.PRNGKey(0)
  kx, kc, kp = jax.random.split(key, 3)
  x = jax.random.normal(kx, (B, d_model, T), jnp.float32)      # PyTorch (B, C, T)
  cross = jax.random.normal(kc, (B, d_model, T), jnp.float32)
  # contiguous-prefix padding mask: batch 0 full length, batch 1 has 48 valid frames
  lengths = jnp.array([T, 48], jnp.int32)
  input_mask = (jnp.arange(T)[None, :] < lengths[:, None]).astype(jnp.float32)

  params = init_params(kp, d_model)

  out = decoder_layer(x, cross, input_mask, params,
                      l_seg=l_seg, dilation=dilation, alpha=alpha)
  out = jax.block_until_ready(out)

  ref = decoder_layer_reference(x, cross, input_mask, params,
                                l_seg=l_seg, dilation=dilation, alpha=alpha)
  # bf16 MXU operands (f32 accumulation) vs pure-f32 reference
  np.testing.assert_allclose(np.asarray(out), np.asarray(ref), atol=5e-2, rtol=5e-2)

  print("KERNEL_OK")
</pallas_src>

<mosaic_0001>
module attributes {stable_mosaic.version = 11 : i64} {
  func.func @_decoder_layer_kernel(%arg0: i32, %arg1: memref<2xi32, #tpu.memory_space<smem>>, %arg2: memref<1x68x128xf32, #tpu.memory_space<vmem>>, %arg3: memref<1x64x128xf32, #tpu.memory_space<vmem>>, %arg4: memref<64x64xf32, #tpu.memory_space<vmem>>, %arg5: memref<384x128xbf16, #tpu.memory_space<vmem>>, %arg6: memref<1x128xf32, #tpu.memory_space<vmem>>, %arg7: memref<128x256xbf16, #tpu.memory_space<vmem>>, %arg8: memref<1x256xf32, #tpu.memory_space<vmem>>, %arg9: memref<128x128xbf16, #tpu.memory_space<vmem>>, %arg10: memref<1x128xf32, #tpu.memory_space<vmem>>, %arg11: memref<128x128xbf16, #tpu.memory_space<vmem>>, %arg12: memref<128x128xbf16, #tpu.memory_space<vmem>>, %arg13: memref<1x128xf32, #tpu.memory_space<vmem>>, %arg14: memref<1x64x128xf32, #tpu.memory_space<vmem>>) attributes {dimension_semantics = [#tpu.dimension_semantics<parallel>], iteration_bounds = array<i64: 2>, scalar_prefetch = 1 : i64, scratch_operands = 0 : i64, tpu.core_type = #tpu.core_type<tc>, window_params = [{transform_indices = @transform_0, window_bounds = array<i64: 1, 68, 128>}, {transform_indices = @transform_1, window_bounds = array<i64: 1, 64, 128>}, {pipeline_mode = #tpu.pipeline_mode<synchronous>, transform_indices = @transform_2, window_bounds = array<i64: 64, 64>}, {pipeline_mode = #tpu.pipeline_mode<synchronous>, transform_indices = @transform_3, window_bounds = array<i64: 384, 128>}, {pipeline_mode = #tpu.pipeline_mode<synchronous>, transform_indices = @transform_4, window_bounds = array<i64: 1, 128>}, {pipeline_mode = #tpu.pipeline_mode<synchronous>, transform_indices = @transform_5, window_bounds = array<i64: 128, 256>}, {pipeline_mode = #tpu.pipeline_mode<synchronous>, transform_indices = @transform_6, window_bounds = array<i64: 1, 256>}, {pipeline_mode = #tpu.pipeline_mode<synchronous>, transform_indices = @transform_7, window_bounds = array<i64: 128, 128>}, {pipeline_mode = #tpu.pipeline_mode<synchronous>, transform_indices = @transform_8, window_bounds = array<i64: 1, 128>}, {pipeline_mode = #tpu.pipeline_mode<synchronous>, transform_indices = @transform_9, window_bounds = array<i64: 128, 128>}, {pipeline_mode = #tpu.pipeline_mode<synchronous>, transform_indices = @transform_10, window_bounds = array<i64: 128, 128>}, {pipeline_mode = #tpu.pipeline_mode<synchronous>, transform_indices = @transform_11, window_bounds = array<i64: 1, 128>}, {transform_indices = @transform_12, window_bounds = array<i64: 1, 64, 128>}]} {
    %0 = arith.index_cast %arg0 : i32 to index
    %1 = memref.load %arg1[%0] : memref<2xi32, #tpu.memory_space<smem>>
    %c0 = arith.constant 0 : index
    %c0_0 = arith.constant 0 : index
    %c0_1 = arith.constant 0 : index
    %2 = vector.load %arg2[%c0, %c0_0, %c0_1] : memref<1x68x128xf32, #tpu.memory_space<vmem>>, vector<1x68x128xf32>
    %3 = vector.shape_cast %2 : vector<1x68x128xf32> to vector<68x128xf32>
    %c0_2 = arith.constant 0 : index
    %c0_3 = arith.constant 0 : index
    %c0_4 = arith.constant 0 : index
    %4 = vector.load %arg3[%c0_2, %c0_3, %c0_4] : memref<1x64x128xf32, #tpu.memory_space<vmem>>, vector<1x64x128xf32>
    %5 = vector.shape_cast %4 : vector<1x64x128xf32> to vector<64x128xf32>
    %6 = vector.extract_strided_slice %3 {offsets = [2, 0], sizes = [64, 128], strides = [1, 1]} : vector<68x128xf32> to vector<64x128xf32>
    %7 = vector.extract_strided_slice %3 {offsets = [0, 0], sizes = [64, 128], strides = [1, 1]} : vector<68x128xf32> to vector<64x128xf32>
    %8 = vector.extract_strided_slice %3 {offsets = [2, 0], sizes = [64, 128], strides = [1, 1]} : vector<68x128xf32> to vector<64x128xf32>
    %9 = vector.extract_strided_slice %3 {offsets = [4, 0], sizes = [64, 128], strides = [1, 1]} : vector<68x128xf32> to vector<64x128xf32>
    %10 = tpu.concatenate %7, %8, %9 in 1 : vector<64x128xf32>, vector<64x128xf32>, vector<64x128xf32> -> vector<64x384xf32>
    %11 = arith.truncf %10 : vector<64x384xf32> to vector<64x384xbf16>
    %c0_5 = arith.constant 0 : index
    %c0_6 = arith.constant 0 : index
    %12 = vector.load %arg5[%c0_5, %c0_6] : memref<384x128xbf16, #tpu.memory_space<vmem>>, vector<384x128xbf16>
    %cst = arith.constant dense<0.000000e+00> : vector<64x128xf32>
    %13 = tpu.matmul %11, %12, %cst {dimension_numbers = #tpu.dot_dimension_numbers<[1], [0], [0], [1], [0, 0, 1, 1], [], []>} : vector<64x384xbf16>, vector<384x128xbf16>, vector<64x128xf32> -> vector<64x128xf32>
    %c0_7 = arith.constant 0 : index
    %c0_8 = arith.constant 0 : index
    %14 = vector.load %arg6[%c0_7, %c0_8] : memref<1x128xf32, #tpu.memory_space<vmem>>, vector<1x128xf32>
    %15 = vector.broadcast %14 : vector<1x128xf32> to vector<64x128xf32>
    %16 = arith.addf %13, %15 : vector<64x128xf32>
    %cst_9 = arith.constant 0.000000e+00 : f32
    %17 = vector.broadcast %cst_9 : f32 to vector<64x128xf32>
    %18 = arith.maximumf %16, %17 : vector<64x128xf32>
    %cst_10 = arith.constant dense<0.000000e+00> : vector<128xf32>
    %19 = vector.multi_reduction <add>, %18, %cst_10 [0] : vector<64x128xf32> to vector<128xf32>
    %20 = vector.shape_cast %19 : vector<128xf32> to vector<1x128xf32>
    %cst_11 = arith.constant 6.400000e+01 : f32
    %21 = vector.broadcast %cst_11 : f32 to vector<1x128xf32>
    %22 = arith.divf %20, %21 : vector<1x128xf32>
    %23 = vector.broadcast %22 : vector<1x128xf32> to vector<64x128xf32>
    %24 = arith.subf %18, %23 : vector<64x128xf32>
    %25 = arith.mulf %24, %24 : vector<64x128xf32>
    %cst_12 = arith.constant dense<0.000000e+00> : vector<128xf32>
    %26 = vector.multi_reduction <add>, %25, %cst_12 [0] : vector<64x128xf32> to vector<128xf32>
    %27 = vector.shape_cast %26 : vector<128xf32> to vector<1x128xf32>
    %cst_13 = arith.constant 6.400000e+01 : f32
    %28 = vector.broadcast %cst_13 : f32 to vector<1x128xf32>
    %29 = arith.divf %27, %28 : vector<1x128xf32>
    %30 = vector.broadcast %22 : vector<1x128xf32> to vector<64x128xf32>
    %31 = arith.subf %18, %30 : vector<64x128xf32>
    %cst_14 = arith.constant 9.99999974E-6 : f32
    %32 = vector.broadcast %cst_14 : f32 to vector<1x128xf32>
    %33 = arith.addf %29, %32 : vector<1x128xf32>
    %34 = math.rsqrt %33 : vector<1x128xf32>
    %35 = vector.broadcast %34 : vector<1x128xf32> to vector<64x128xf32>
    %36 = arith.mulf %31, %35 : vector<64x128xf32>
    %37 = arith.truncf %36 : vector<64x128xf32> to vector<64x128xbf16>
    %c0_15 = arith.constant 0 : index
    %c0_16 = arith.constant 0 : index
    %38 = vector.load %arg7[%c0_15, %c0_16] : memref<128x256xbf16, #tpu.memory_space<vmem>>, vector<128x256xbf16>
    %cst_17 = arith.constant dense<0.000000e+00> : vector<64x256xf32>
    %39 = tpu.matmul %37, %38, %cst_17 {dimension_numbers = #tpu.dot_dimension_numbers<[1], [0], [0], [1], [0, 0, 1, 1], [], []>} : vector<64x128xbf16>, vector<128x256xbf16>, vector<64x256xf32> -> vector<64x256xf32>
    %c0_18 = arith.constant 0 : index
    %c0_19 = arith.constant 0 : index
    %40 = vector.load %arg8[%c0_18, %c0_19] : memref<1x256xf32, #tpu.memory_space<vmem>>, vector<1x256xf32>
    %41 = vector.broadcast %40 : vector<1x256xf32> to vector<64x256xf32>
    %42 = arith.addf %39, %41 : vector<64x256xf32>
    %43 = vector.extract_strided_slice %42 {offsets = [0, 0], sizes = [64, 128], strides = [1, 1]} : vector<64x256xf32> to vector<64x128xf32>
    %44 = vector.extract_strided_slice %42 {offsets = [0, 128], sizes = [64, 128], strides = [1, 1]} : vector<64x256xf32> to vector<64x128xf32>
    %45 = arith.truncf %5 : vector<64x128xf32> to vector<64x128xbf16>
    %c0_20 = arith.constant 0 : index
    %c0_21 = arith.constant 0 : index
    %46 = vector.load %arg9[%c0_20, %c0_21] : memref<128x128xbf16, #tpu.memory_space<vmem>>, vector<128x128xbf16>
    %cst_22 = arith.constant dense<0.000000e+00> : vector<64x128xf32>
    %47 = tpu.matmul %45, %46, %cst_22 {dimension_numbers = #tpu.dot_dimension_numbers<[1], [0], [0], [1], [0, 0, 1, 1], [], []>} : vector<64x128xbf16>, vector<128x128xbf16>, vector<64x128xf32> -> vector<64x128xf32>
    %c0_23 = arith.constant 0 : index
    %c0_24 = arith.constant 0 : index
    %48 = vector.load %arg10[%c0_23, %c0_24] : memref<1x128xf32, #tpu.memory_space<vmem>>, vector<1x128xf32>
    %49 = vector.broadcast %48 : vector<1x128xf32> to vector<64x128xf32>
    %50 = arith.addf %47, %49 : vector<64x128xf32>
    %51 = arith.truncf %43 : vector<64x128xf32> to vector<64x128xbf16>
    %52 = arith.truncf %44 : vector<64x128xf32> to vector<64x128xbf16>
    %cst_25 = arith.constant dense<0.000000e+00> : vector<64x64xf32>
    %53 = tpu.matmul %51, %52, %cst_25 {dimension_numbers = #tpu.dot_dimension_numbers<[1], [1], [0], [0], [0, 0, 1, 0], [], []>} : vector<64x128xbf16>, vector<64x128xbf16>, vector<64x64xf32> -> vector<64x64xf32>
    %54 = tpu.iota {dimensions = array<i32: 1>} : vector<1x64xi32>
    %55 = vector.broadcast %1 : i32 to vector<1x64xi32>
    %56 = arith.cmpi slt, %54, %55 : vector<1x64xi32>
    %cst_26 = arith.constant 0.000000e+00 : f32
    %cst_27 = arith.constant -1.000000e+09 : f32
    %57 = vector.broadcast %cst_26 : f32 to vector<1x64xf32>
    %58 = vector.broadcast %cst_27 : f32 to vector<1x64xf32>
    %59 = arith.select %56, %57, %58 : vector<1x64xi1>, vector<1x64xf32>
    %c0_28 = arith.constant 0 : index
    %c0_29 = arith.constant 0 : index
    %60 = vector.load %arg4[%c0_28, %c0_29] : memref<64x64xf32, #tpu.memory_space<vmem>>, vector<64x64xf32>
    %61 = arith.addf %53, %60 : vector<64x64xf32>
    %62 = vector.broadcast %59 : vector<1x64xf32> to vector<64x64xf32>
    %63 = arith.addf %61, %62 : vector<64x64xf32>
    %cst_30 = arith.constant dense<0xFF800000> : vector<64xf32>
    %64 = vector.multi_reduction <maximumf>, %63, %cst_30 [1] : vector<64x64xf32> to vector<64xf32>
    %65 = vector.shape_cast %64 : vector<64xf32> to vector<64x1xf32>
    %66 = vector.broadcast %65 : vector<64x1xf32> to vector<64x64xf32>
    %67 = arith.subf %63, %66 : vector<64x64xf32>
    %68 = math.exp %67 : vector<64x64xf32>
    %cst_31 = arith.constant dense<0.000000e+00> : vector<64xf32>
    %69 = vector.multi_reduction <add>, %68, %cst_31 [1] : vector<64x64xf32> to vector<64xf32>
    %70 = vector.shape_cast %69 : vector<64xf32> to vector<64x1xf32>
    %71 = tpu.reciprocal %70 {approx = true} : vector<64x1xf32> -> vector<64x1xf32>
    %72 = vector.broadcast %71 : vector<64x1xf32> to vector<64x64xf32>
    %73 = arith.mulf %68, %72 : vector<64x64xf32>
    %74 = arith.truncf %73 : vector<64x64xf32> to vector<64x64xbf16>
    %75 = arith.truncf %50 : vector<64x128xf32> to vector<64x128xbf16>
    %cst_32 = arith.constant dense<0.000000e+00> : vector<64x128xf32>
    %76 = tpu.matmul %74, %75, %cst_32 {dimension_numbers = #tpu.dot_dimension_numbers<[1], [0], [0], [1], [0, 0, 1, 1], [], []>} : vector<64x64xbf16>, vector<64x128xbf16>, vector<64x128xf32> -> vector<64x128xf32>
    %77 = arith.truncf %76 : vector<64x128xf32> to vector<64x128xbf16>
    %c0_33 = arith.constant 0 : index
    %c0_34 = arith.constant 0 : index
    %78 = vector.load %arg11[%c0_33, %c0_34] : memref<128x128xbf16, #tpu.memory_space<vmem>>, vector<128x128xbf16>
    %cst_35 = arith.constant dense<0.000000e+00> : vector<64x128xf32>
    %79 = tpu.matmul %77, %78, %cst_35 {dimension_numbers = #tpu.dot_dimension_numbers<[1], [0], [0], [1], [0, 0, 1, 1], [], []>} : vector<64x128xbf16>, vector<128x128xbf16>, vector<64x128xf32> -> vector<64x128xf32>
    %80 = arith.truncf %18 : vector<64x128xf32> to vector<64x128xbf16>
    %c0_36 = arith.constant 0 : index
    %c0_37 = arith.constant 0 : index
    %81 = vector.load %arg12[%c0_36, %c0_37] : memref<128x128xbf16, #tpu.memory_space<vmem>>, vector<128x128xbf16>
    %cst_38 = arith.constant dense<0.000000e+00> : vector<64x128xf32>
    %82 = tpu.matmul %80, %81, %cst_38 {dimension_numbers = #tpu.dot_dimension_numbers<[1], [0], [0], [1], [0, 0, 1, 1], [], []>} : vector<64x128xbf16>, vector<128x128xbf16>, vector<64x128xf32> -> vector<64x128xf32>
    %83 = arith.addf %79, %82 : vector<64x128xf32>
    %c0_39 = arith.constant 0 : index
    %c0_40 = arith.constant 0 : index
    %84 = vector.load %arg13[%c0_39, %c0_40] : memref<1x128xf32, #tpu.memory_space<vmem>>, vector<1x128xf32>
    %85 = vector.broadcast %84 : vector<1x128xf32> to vector<64x128xf32>
    %86 = arith.addf %83, %85 : vector<64x128xf32>
    %87 = tpu.iota {dimensions = array<i32: 0>} : vector<64x1xi32>
    %88 = vector.broadcast %1 : i32 to vector<64x1xi32>
    %89 = arith.cmpi slt, %87, %88 : vector<64x1xi32>
    %cst_41 = arith.constant 1.000000e+00 : f32
    %cst_42 = arith.constant 0.000000e+00 : f32
    %90 = vector.broadcast %cst_41 : f32 to vector<64x1xf32>
    %91 = vector.broadcast %cst_42 : f32 to vector<64x1xf32>
    %92 = arith.select %89, %90, %91 : vector<64x1xi1>, vector<64x1xf32>
    %93 = arith.addf %6, %86 : vector<64x128xf32>
    %94 = vector.broadcast %92 : vector<64x1xf32> to vector<64x128xf32>
    %95 = arith.mulf %93, %94 : vector<64x128xf32>
    %c0_43 = arith.constant 0 : index
    %c0_44 = arith.constant 0 : index
    %c0_45 = arith.constant 0 : index
    %96 = vector.load %arg14[%c0_43, %c0_44, %c0_45] : memref<1x64x128xf32, #tpu.memory_space<vmem>>, vector<1x64x128xf32>
    %97 = vector.shape_cast %96 : vector<1x64x128xf32> to vector<64x128xf32>
    %98 = vector.shape_cast %95 : vector<64x128xf32> to vector<1x64x128xf32>
    tpu.vector_store %arg14[%c0_43, %c0_44, %c0_45], %98 {strides = array<i32>} : memref<1x64x128xf32, #tpu.memory_space<vmem>>, vector<1x64x128xf32>,
    return
  }
  func.func @transform_0(%arg0: i32, %arg1: memref<2xi32, #tpu.memory_space<smem>>) -> (i32, i32, i32) {
    %c0_i32 = arith.constant 0 : i32
    %c0_i32_0 = arith.constant 0 : i32
    %c0_i32_1 = arith.constant 0 : i32
    return %arg0, %c0_i32, %c0_i32_0 : i32, i32, i32
  }
  func.func @transform_1(%arg0: i32, %arg1: memref<2xi32, #tpu.memory_space<smem>>) -> (i32, i32, i32) {
    %c0_i32 = arith.constant 0 : i32
    %c0_i32_0 = arith.constant 0 : i32
    %c0_i32_1 = arith.constant 0 : i32
    return %arg0, %c0_i32, %c0_i32_0 : i32, i32, i32
  }
  func.func @transform_2(%arg0: i32, %arg1: memref<2xi32, #tpu.memory_space<smem>>) -> (i32, i32) {
    %c0_i32 = arith.constant 0 : i32
    %c0_i32_0 = arith.constant 0 : i32
    %c0_i32_1 = arith.constant 0 : i32
    return %c0_i32, %c0_i32_0 : i32, i32
  }
  func.func @transform_3(%arg0: i32, %arg1: memref<2xi32, #tpu.memory_space<smem>>) -> (i32, i32) {
    %c0_i32 = arith.constant 0 : i32
    %c0_i32_0 = arith.constant 0 : i32
    %c0_i32_1 = arith.constant 0 : i32
    return %c0_i32, %c0_i32_0 : i32, i32
  }
  func.func @transform_4(%arg0: i32, %arg1: memref<2xi32, #tpu.memory_space<smem>>) -> (i32, i32) {
    %c0_i32 = arith.constant 0 : i32
    %c0_i32_0 = arith.constant 0 : i32
    %c0_i32_1 = arith.constant 0 : i32
    return %c0_i32, %c0_i32_0 : i32, i32
  }
  func.func @transform_5(%arg0: i32, %arg1: memref<2xi32, #tpu.memory_space<smem>>) -> (i32, i32) {
    %c0_i32 = arith.constant 0 : i32
    %c0_i32_0 = arith.constant 0 : i32
    %c0_i32_1 = arith.constant 0 : i32
    return %c0_i32, %c0_i32_0 : i32, i32
  }
  func.func @transform_6(%arg0: i32, %arg1: memref<2xi32, #tpu.memory_space<smem>>) -> (i32, i32) {
    %c0_i32 = arith.constant 0 : i32
    %c0_i32_0 = arith.constant 0 : i32
    %c0_i32_1 = arith.constant 0 : i32
    return %c0_i32, %c0_i32_0 : i32, i32
  }
  func.func @transform_7(%arg0: i32, %arg1: memref<2xi32, #tpu.memory_space<smem>>) -> (i32, i32) {
    %c0_i32 = arith.constant 0 : i32
    %c0_i32_0 = arith.constant 0 : i32
    %c0_i32_1 = arith.constant 0 : i32
    return %c0_i32, %c0_i32_0 : i32, i32
  }
  func.func @transform_8(%arg0: i32, %arg1: memref<2xi32, #tpu.memory_space<smem>>) -> (i32, i32) {
    %c0_i32 = arith.constant 0 : i32
    %c0_i32_0 = arith.constant 0 : i32
    %c0_i32_1 = arith.constant 0 : i32
    return %c0_i32, %c0_i32_0 : i32, i32
  }
  func.func @transform_9(%arg0: i32, %arg1: memref<2xi32, #tpu.memory_space<smem>>) -> (i32, i32) {
    %c0_i32 = arith.constant 0 : i32
    %c0_i32_0 = arith.constant 0 : i32
    %c0_i32_1 = arith.constant 0 : i32
    return %c0_i32, %c0_i32_0 : i32, i32
  }
  func.func @transform_10(%arg0: i32, %arg1: memref<2xi32, #tpu.memory_space<smem>>) -> (i32, i32) {
    %c0_i32 = arith.constant 0 : i32
    %c0_i32_0 = arith.constant 0 : i32
    %c0_i32_1 = arith.constant 0 : i32
    return %c0_i32, %c0_i32_0 : i32, i32
  }
  func.func @transform_11(%arg0: i32, %arg1: memref<2xi32, #tpu.memory_space<smem>>) -> (i32, i32) {
    %c0_i32 = arith.constant 0 : i32
    %c0_i32_0 = arith.constant 0 : i32
    %c0_i32_1 = arith.constant 0 : i32
    return %c0_i32, %c0_i32_0 : i32, i32
  }
  func.func @transform_12(%arg0: i32, %arg1: memref<2xi32, #tpu.memory_space<smem>>) -> (i32, i32, i32) {
    %c0_i32 = arith.constant 0 : i32
    %c0_i32_0 = arith.constant 0 : i32
    %c0_i32_1 = arith.constant 0 : i32
    return %arg0, %c0_i32, %c0_i32_0 : i32, i32, i32
  }
}

</mosaic_0001>

<bundles_post_ra>
// kernel: tpu_custom_call.1
= control target key start
LH: loop header
LB: loop body
LE: loop exit
PB: predicated region body
PF: predicated region fallthrough
CT: control target
= control target key end

     0   :  { %s2656_s28 = smov [#allocation3]   ;;  %s3271_s0 = inlined_call_operand.vmem [shape: s32[2], index: 0, kind: input, shape index: {}]   ;;  %s3272_s1 = inlined_call_operand.vmem [shape: f32[2,68,128], index: 1, kind: input, shape index: {}]   ;;  %s3273_s2 = inlined_call_operand.hbm [shape: f32[2,64,128], index: 2, kind: input, shape index: {}]   ;;  %s3274_s3 = inlined_call_operand.vmem [shape: f32[64,64], index: 3, kind: input, shape index: {}]   ;;  %s3275_s4 = inlined_call_operand.vmem [shape: bf16[384,128], index: 4, kind: input, shape index: {}]   ;;  %s3276_s5 = inlined_call_operand.vmem [shape: f32[1,128], index: 5, kind: input, shape index: {}]   ;;  %s3277_s6 = inlined_call_operand.hbm [shape: bf16[128,256], index: 6, kind: input, shape index: {}]   ;;  %s3278_s7 = inlined_call_operand.vmem [shape: f32[1,256], index: 7, kind: input, shape index: {}]   ;;  %s3279_s8 = inlined_call_operand.hbm [shape: bf16[128,128], index: 8, kind: input, shape index: {}]   ;;  %s3280_s9 = inlined_call_operand.vmem [shape: f32[1,128], index: 9, kind: input, shape index: {}]   ;;  %s3281_s10 = inlined_call_operand.hbm [shape: bf16[128,128], index: 10, kind: input, shape index: {}]   ;;  %s3282_s11 = inlined_call_operand.hbm [shape: bf16[128,128], index: 11, kind: input, shape index: {}]   ;;  %s3283_s12 = inlined_call_operand.vmem [shape: f32[1,128], index: 12, kind: input, shape index: {}]   ;;  %s3284_s13 = inlined_call_operand.hbm [shape: f32[2,64,128], index: 13, kind: output, shape index: {}]  }
   0x1   :  { %3289 = sst [smem:[#allocation21_spill]] %s3277_s6  ;;  %s19_s27 = sshll.u32 %s3271_s0, 4  ;;  %s20_s27 = int_to_ptr.vmem [resolvable:$true] %s19_s27 }
   0x2   :  { %3290 = sst [smem:[#allocation22_spill]] %s3279_s8 }
   0x3   :  { %3291 = sst [smem:[#allocation23_spill]] %s3281_s10 }
   0x4   :  { %3292 = sst [smem:[#allocation24_spill]] %s3282_s11 }
   0x5   :  { %22 = dma.vmem_to_smem %s20_s27, 16, %s2656_s28, [#allocation2] }
   0x6   :  { %2622 = dma.done.wait [#allocation2], 16 }
   0x7   :  { %2623 = vsyncadd [#allocation2], 4294967280 }
   0x8   :  { %25 = sfence }
   0x9   :  { %26 = vsyncpa [#allocation5], 0 }
   0xa   :  { %28 = vsyncpa [#allocation5 + $0x1], 0 }
   0xb   :  { %29 = vsyncpa [#allocation8], 0 }
   0xc   :  { %30 = vsyncpa [#allocation11], 0 }
   0xd   :  { %31 = vsyncpa [#allocation6], 0 }
   0xe   :  { %33 = vsyncpa [#allocation6 + $0x1], 0  ;;  %s2743_s29 = smov 0   ;;  %s2745_s30 = smov 0  }
   0xf   :  { %s2747_s14 = smov 0   ;;  %s2749_s15 = smov 0  }
  0x10 LB: > { %3293 = sst [smem:[#allocation19_spill]] %s2642_s29  ;;  %s2764_s0 = sadd.s32 4294967295, %s2654_s15   ;;  %s2654_s15 = sphi %s2749_s15, %s3314_s15   ;;  %s2650_s14 = sphi %s2747_s14, %s3313_s14   ;;  %s2646_s30 = sphi %s2745_s30, %s3312_s30   ;;  %s2642_s29 = sphi %s2743_s29, %s3311_s29  }
  0x11   : > { %s1905_s16 = sadd.s32 4294967294, %s2654_s15   ;;  %p85_p0 = scmp.ne.s32.totalorder %s2646_s30, %s2642_s29 }
  0x12   : > { %p86_p1 = scmp.eq.s32.totalorder %s2764_s0, 0  ;;  %p319_p2 = scmp.eq.s32.totalorder %s2764_s0, 1 }
  0x13   : > { %p325_p3 = scmp.eq.s32.totalorder %s1905_s16, 1  ;;  %p1906_p5 = scmp.ge.s32.totalorder %s2654_s15, 1 }
  0x14   : > { %p2773_p4 = por %p86_p1, %p85_p0  ;;  %p332_p7 = scmp.lt.s32.totalorder %s2654_s15, 3 }
  0x15   : > { %p2778_p6 = por %p325_p3, %p85_p0  ;;  %s3297_s6 = sld [smem:[#allocation21_spill]] }
  0x16   : > { %p2786_p8 = pnand %p1906_p5, %p332_p7  ;;  %s2657_s23 = smov [#allocation7]  }
  0x17   : > { %s3295_s18 = scalar_select %p2778_p6, 1, 0 }
  0x18   : > { %p2291_p9 = pneg %p2786_p8  ;;  %s354_s24 = sshll.u32 %s2657_s23, 4  ;;  %s355_s24 = int_to_ptr.vmem [resolvable:$true] %s354_s24 }
  0x19   : > { %3296 = sst [smem:[#allocation20_spill]] %s3295_s18  ;;  %s3287_s16 = smov 128  }
  0x1a   : > { %p2794_p10 = pnand %p2291_p9, %p86_p1  ;;  %s3300_s10 = sld [smem:[#allocation23_spill]] }
  0x1b   : > { %s352_s21 = sshll.u32 %s3297_s6, 4  ;;  %s3288_s19 = smov 8   ;;  %s353_s21 = int_to_ptr.hbm [resolvable:$true] %s352_s21 }
  0x1c   : > { %2294 = dma.hbm_to_vmem [thread:$0]  (!%p2794_p10), %s353_s21, 2048, %s355_s24, [#allocation8], %s3287_s16, %s3287_s16, %s3288_s19  }
  0x1d   : > { %s2660_s20 = smov [#allocation10]   ;;  %s3301_s8 = sld [smem:[#allocation22_spill]] }
  0x1e   : > { %s388_s23 = sshll.u32 %s2660_s20, 4  ;;  %s2661_s26 = smov 64   ;;  %s389_s23 = int_to_ptr.vmem [resolvable:$true] %s388_s23 }
  0x1f   : > { %s2662_s27 = smov 4   ;;  %s3302_s11 = sld [smem:[#allocation24_spill]] }
  0x20   : > { %s386_s28 = sshll.u32 %s3300_s10, 4  ;;  %s2663_s6 = smov [#allocation9]   ;;  %s387_s28 = int_to_ptr.hbm [resolvable:$true] %s386_s28 }
  0x21   : > { %2300 = dma.hbm_to_vmem [thread:$0]  (!%p2794_p10), %s387_s28, 1024, %s389_s23, [#allocation11], %s2661_s26, %s2661_s26, %s2662_s27  }
  0x22   : > { %s371_s18 = sshll.u32 %s2663_s6, 4  ;;  %s2664_s16 = smov [#allocation12]   ;;  %s372_s18 = int_to_ptr.vmem [resolvable:$true] %s371_s18 }
  0x23   : > { %s369_s29 = sshll.u32 %s3301_s8, 4  ;;  %s402_s19 = sshll.u32 %s2664_s16, 4  ;;  %s370_s29 = int_to_ptr.hbm [resolvable:$true] %s369_s29  ;;  %s403_s19 = int_to_ptr.vmem [resolvable:$true] %s402_s19 }
  0x24   : > { %2297 = dma.hbm_to_vmem [thread:$0]  (!%p2794_p10), %s370_s29, 1024, %s372_s18, [#allocation8], %s2661_s26, %s2661_s26, %s2662_s27  }
  0x25   : > { %s400_s20 = sshll.u32 %s3302_s11, 4  ;;  %s2820_s28 = sadd.s32 1, %s2654_s15   ;;  %s401_s20 = int_to_ptr.hbm [resolvable:$true] %s400_s20 }
  0x26   : > { %2303 = dma.hbm_to_vmem [thread:$0]  (!%p2794_p10), %s401_s20, 1024, %s403_s19, [#allocation11], %s2661_s26, %s2661_s26, %s2662_s27  }
  0x27   : > { %s72_s23 = sadd.s32 1, %s2650_s14  ;;  %s69_s21 = ssub.s32 %s2654_s15, %s2820_s28 }
  0x28   : > { %p79_p12 = scmp.ne.s32.totalorder %s2650_s14, %s2646_s30  ;;  %p70_p13 = scmp.eq.s32.totalorder %s69_s21, 0 }
  0x29   : > { %p80_p0 = scmp.eq.s32.totalorder %s2654_s15, 0  ;;  %p2316_p5 = scmp.lt.s32.totalorder %s2654_s15, 2 }
  0x2a   : > { %p2830_p3 = por %p319_p2, %p79_p12  ;;  %s427_s16 = sand.u32 1, %s2650_s14  }
  0x2b   : > { %s2836_s29 = scalar_select %p70_p13, %s2650_s14, %s72_s23  }
  0x2c   : > { %p81_p7 = por %p80_p0, %p79_p12  ;;  %s1912_s25 = sshll.u32 %s427_s16, 6 }
  0x2d   : > { %s2188_s19 = sshll.u32 %s2654_s15, 6  ;;  %s431_s6 = scalar_lea.vmem [#allocation4], %s1912_s25 }
  0x2e   : > { %s436_s20 = scalar_lea.hbm %s3273_s2, %s2188_s19  ;;  %s439_s18 = sshll.u32 %s431_s6, 4  ;;  %s440_s18 = int_to_ptr.vmem [resolvable:$true] %s439_s18 }
  0x2f   : > { %s437_s21 = sshll.u32 %s436_s20, 4  ;;  %p2843_p2 = pnand %p2316_p5, %p81_p7  ;;  %s438_s21 = int_to_ptr.hbm [resolvable:$true] %s437_s21 }
  0x30   : > { %s428_s23 = scalar_lea.sflag [#allocation5], %s427_s16  ;;  %s2548_s10 = sshra.s32 %s438_s21, 4  ;;  %s2549_s10 = int_to_ptr.hbm [resolvable:$true] %s2548_s10 }
  0x31   : > { %s2550_s11 = scalar_lea.hbm %s2549_s10, 64  ;;  %p2552_p10 = pneg %p2843_p2 }
  0x32   : > { %p2551_p9 = scmp.ne.s32.totalorder %s2549_s10, %s2550_s11  ;;  %s2555_s26 = scalar_lea.hbm %s3273_s2, 128 }
  0x33   : > { %p2556_p0 = scmp.lt.s32.totalorder %s2549_s10, %s3273_s2  ;;  %p2557_p5 = scmp.lt.s32.totalorder %s2555_s26, %s2550_s11 }
  0x34   : > { %p2553_p12 = pnand %p2552_p10, %p2551_p9 }
  0x35   : > { %p2558_p7 = por %p2557_p5, %p2556_p0 }
  0x36   : > { %p2554_p13 = pneg %p2553_p12 }
  0x38   : > { %p2559_p11 = pnand %p2558_p7, %p2554_p13 }
  0x3a   : > { %2562 = shalt.err (!%p2559_p11)
}
  0x3b   : > { %s3305_s16 = smov 8   ;;  %s3306_s6 = smov 128  }
  0x3c   : > { %2307 = dma.hbm_to_vmem [thread:$0]  (!%p2843_p2), %s438_s21, 1024, %s440_s18, %s428_s23, %s3306_s6, %s3306_s6, %s3305_s16  }
  0x3d   : > { %451 = sbr.rel (%p2786_p8) target bundleno = 1355 (0x54b), region = 68  ;;  %s2863_s19 = sand.u32 (!%p2786_p8), 1, %s2646_s30  }
  0x3e   : > { %s1916_s10 = sshll.u32 (!%p2786_p8), %s2863_s19, 6  ;;  %s454_s11 = scalar_lea.sflag (!%p2786_p8), [#allocation5], %s2863_s19 }
  0x3f   : > { %s2869_s25 = scalar_lea.vmem (!%p2786_p8), [#allocation4], %s1916_s10 }
  0x42   : > { %2625 = dma.done.wait (%p2773_p4), %s454_s11, 1024  }
  0x43   : > { %2627 = vsyncadd (%p2773_p4), %s454_s11, 4294966272 }
  0x44   : > { %2629 = dma.done.wait (%p86_p1), [#allocation8], 3072  }
  0x45   : > { %2631 = vsyncadd (%p86_p1), [#allocation8], 4294964224 }
  0x46   : > { %2633 = dma.done.wait (%p86_p1), [#allocation11], 2048  }
  0x47   : > { %2635 = vsyncadd (%p86_p1), [#allocation11], 4294965248  ;;  %v2196_v0 = vld [vmem:[%s3275_s4 + $0x38] sm:$0xff]  ;;  %v2195_v2 = vld [vmem:[%s3275_s4 + $0x30] sm:$0xff]  ;;  %p524_p1 = scmp.lt.s32.totalorder %s2764_s0, 1  ;;  %vm557_vm0 = vcmask 1045504  }
  0x48   : > { %v2204_v1 = vld [vmem:[%s3275_s4 + $0x78] sm:$0xff]  ;;  %2254 = vmatpush.bf16.msra.mxu2 %v2196_v0  ;;  %v2203_v3 = vld [vmem:[%s3275_s4 + $0x70] sm:$0xff]  ;;  %817 = vmatpush.bf16.msra.mxu0 %v2196_v0  ;;  %v2194_v4 = vld [vmem:[%s3275_s4 + $0x28] sm:$0xff]  ;;  %vm583_vm1 = vcmask 1043456   ;;  %s530_s11 = sld [smem:[#allocation3 + %s2764_s0]]  ;;  %vm1305_vm7 = vcmask 523264  }
  0x49   : > { %2262 = vmatpush.bf16.msra.mxu3 %v2204_v1  ;;  %846 = vmatpush.bf16.msra.mxu1 %v2204_v1  ;;  %v2202_v5 = vld [vmem:[%s3275_s4 + $0x68] sm:$0xff]  ;;  %s525_s8 = scalar_select %p524_p1, %s2764_s0, 1  ;;  %v2193_v6 = vld [vmem:[%s3275_s4 + $0x20] sm:$0xff]  ;;  %v2192_v8 = vld [vmem:[%s3275_s4 + $0x18] sm:$0xff]  ;;  %vm1682_vm10 = vcmask 1041408  }
  0x4a   : > { %v2201_v7 = vld [vmem:[%s3275_s4 + $0x60] sm:$0xff]  ;;  %v2200_v9 = vld [vmem:[%s3275_s4 + $0x58] sm:$0xff]  ;;  %v2191_v10 = vld [vmem:[%s3275_s4 + $0x10] sm:$0xff]  ;;  %s3180_s20 = scalar_lea.vmem [#allocation13], %s1916_s10  ;;  %s2253_s10 = sshll.u32 %s2764_s0, 6 }
  0x4b   : > { %s2270_s23 = smul.u32 72, %s525_s8  ;;  %v2199_v11 = vld [vmem:[%s3275_s4 + $0x50] sm:$0xff]  ;;  %v2190_v15 = vld [vmem:[%s3275_s4 + $0x8] sm:$0xff]  ;;  %v2189_v20 = vld [vmem:[%s3275_s4] sm:$0xff]  ;;  %s1779_s8 = sshll.u32 %s3180_s20, 4  ;;  %s1780_s8 = int_to_ptr.vmem [resolvable:$true] %s1779_s8 }
  0x4c   : > { %2255 = vmatpush.bf16.msra.mxu2 %v2195_v2  ;;  %818 = vmatpush.bf16.msra.mxu0 %v2195_v2  ;;  %v2198_v16 = vld [vmem:[%s3275_s4 + $0x48] sm:$0xff]  ;;  %v2197_v21 = vld [vmem:[%s3275_s4 + $0x40] sm:$0xff]  ;;  %v2212_v24 = vld [vmem:[%s3275_s4 + $0xb8] sm:$0xff]  ;;  %s1767_s0 = scalar_lea.sflag [#allocation6], %s2863_s19  ;;  %s2598_s26 = scalar_lea.hbm %s3284_s13, 128 }
  0x4d   : > { %2263 = vmatpush.bf16.msra.mxu3 %v2203_v3  ;;  %847 = vmatpush.bf16.msra.mxu1 %v2203_v3  ;;  %s2918_s22 = scalar_lea.vmem %s3272_s1, %s2270_s23  ;;  %v2211_v27 = vld [vmem:[%s3275_s4 + $0xb0] sm:$0xff]  ;;  %v2210_v37 = vld [vmem:[%s3275_s4 + $0xa8] sm:$0xff]  ;;  %v2209_v43 = vld [vmem:[%s3275_s4 + $0xa0] sm:$0xff] }
  0x4e   : > { %v2927_v12 = vld [vmem:[%s2918_s22 + $0x20] sm:$0xff]  ;;  %v2930_v13 = vld [vmem:[%s2918_s22 + $0x28] sm:$0xff]  ;;  %v2933_v14 = vld [vmem:[%s2918_s22 + $0x30] sm:$0xff] }
  0x4f   : > { %v565_v17 = vrot.slane %v2927_v12, 2  ;;  %v567_v18 = vrot.slane %v2930_v13, 2  ;;  %v569_v19 = vrot.slane %v2933_v14, 2  ;;  %v615_v25 = vpack.c.bf16 %v2930_v13, %v2927_v12  ;;  %v531_v28 = vld [vmem:[%s2918_s22] sm:$0xff]  ;;  %v532_v29 = vld [vmem:[%s2918_s22 + $0x8] sm:$0xff]  ;;  %v533_v30 = vld [vmem:[%s2918_s22 + $0x10] sm:$0xff] }
  0x50   : > { %2256 = vmatpush.bf16.msra.mxu2 %v2194_v4  ;;  %819 = vmatpush.bf16.msra.mxu0 %v2194_v4  ;;  %v558_v31 = vrot.slane %v531_v28, 2  ;;  %v559_v32 = vrot.slane %v532_v29, 2  ;;  %v561_v33 = vrot.slane %v533_v30, 2  ;;  %v609_v34 = vpack.c.bf16 %v532_v29, %v531_v28  ;;  %v538_v38 = vld [vmem:[%s2918_s22 + $0x38] sm:$0xff]  ;;  %v539_v39 = vld [vmem:[%s2918_s22 + $0x40] sm:$0xf] }
  0x51   : > { %2264 = vmatpush.bf16.msra.mxu3 %v2202_v5  ;;  %848 = vmatpush.bf16.msra.mxu1 %v2202_v5  ;;  %v568_v22 = vsel %vm557_vm0, %v565_v17, %v567_v18  ;;  %v570_v23 = vsel %vm557_vm0, %v567_v18, %v569_v19  ;;  %v571_v41 = vrot.slane %v538_v38, 2  ;;  %v573_v42 = vrot.slane %v539_v39, 2  ;;  %v2208_v46 = vld [vmem:[%s3275_s4 + $0x98] sm:$0xff]  ;;  %v2207_v49 = vld [vmem:[%s3275_s4 + $0x90] sm:$0xff]  ;;  %v2206_v55 = vld [vmem:[%s3275_s4 + $0x88] sm:$0xff] }
  0x52   : > { %v616_v26 = vpack.c.bf16 %v570_v23, %v568_v22  ;;  %v560_v35 = vsel %vm557_vm0, %v558_v31, %v559_v32  ;;  %v562_v36 = vsel %vm557_vm0, %v559_v32, %v561_v33  ;;  %v618_v47 = vpack.c.bf16 %v538_v38, %v2933_v14  ;;  %v534_v50 = vld [vmem:[%s2918_s22 + $0x18] sm:$0xff]  ;;  %v2205_v60 = vld [vmem:[%s3275_s4 + $0x80] sm:$0xff] }
  0x53   : > { %v610_v40 = vpack.c.bf16 %v562_v36, %v560_v35  ;;  %v572_v44 = vsel %vm557_vm0, %v569_v19, %v571_v41  ;;  %v574_v45 = vsel %vm557_vm0, %v571_v41, %v573_v42  ;;  %v563_v51 = vrot.slane %v534_v50, 2  ;;  %v3007_v22 = vld [vmem:[%s3276_s5] ss:$0 sm:$0xff] }
  0x54   : > { %2257 = vmatpush.bf16.msra.mxu2 %v2193_v6  ;;  %820 = vmatpush.bf16.msra.mxu0 %v2193_v6  ;;  %v619_v48 = vpack.c.bf16 %v574_v45, %v572_v44  ;;  %v612_v52 = vpack.c.bf16 %v534_v50, %v533_v30  ;;  %v584_v57 = vrot.slane %v531_v28, 4  ;;  %v585_v58 = vrot.slane %v532_v29, 4 }
  0x55   : > { %2265 = vmatpush.bf16.msra.mxu3 %v2201_v7  ;;  %849 = vmatpush.bf16.msra.mxu1 %v2201_v7  ;;  %v564_v53 = vsel %vm557_vm0, %v561_v33, %v563_v51  ;;  %v566_v54 = vsel %vm557_vm0, %v563_v51, %v565_v17  ;;  %v587_v59 = vrot.slane %v533_v30, 4  ;;  %v589_v0 = vrot.slane %v534_v50, 4 }
  0x56   : > { %v613_v56 = vpack.c.bf16 %v566_v54, %v564_v53  ;;  %v586_v61 = vsel %vm583_vm1, %v584_v57, %v585_v58  ;;  %v591_v1 = vrot.slane %v2927_v12, 4  ;;  %v593_v5 = vrot.slane %v2930_v13, 4 }
  0x57   : > { %v588_v62 = vsel %vm583_vm1, %v585_v58, %v587_v59  ;;  %v590_v2 = vsel %vm583_vm1, %v587_v59, %v589_v0  ;;  %v595_v6 = vrot.slane %v2933_v14, 4 }
  0x58   : > { %2258 = vmatpush.bf16.msra.mxu2 %v2192_v8  ;;  %821 = vmatpush.bf16.msra.mxu0 %v2192_v8  ;;  %v611_v63 = vpack.c.bf16 %v588_v62, %v586_v61  ;;  %v592_v3 = vsel %vm583_vm1, %v589_v0, %v591_v1  ;;  %v594_v7 = vsel %vm583_vm1, %v591_v1, %v593_v5 }
  0x59   : > { %2266 = vmatpush.bf16.msra.mxu3 %v2200_v9  ;;  %850 = vmatpush.bf16.msra.mxu1 %v2200_v9  ;;  %v614_v4 = vpack.c.bf16 %v592_v3, %v590_v2  ;;  %v596_v8 = vsel %vm583_vm1, %v593_v5, %v595_v6 }
  0x5a   : > { %v617_v9 = vpack.c.bf16 %v596_v8, %v594_v7  ;;  %v2665_v7 = vmov 64.0   ;;  %v2077_v8 = vld [vmem:[#allocation7 + $0x70] sm:$0xf] }
  0x5b   : > { %2371 = vrcp.f32 %v2665_v7 }
  0x5c   : > { %2259 = vmatpush.bf16.msra.mxu2 %v2191_v10  ;;  %822 = vmatpush.bf16.msra.mxu0 %v2191_v10  ;;  %v597_v10 = vrot.slane %v538_v38, 4 }
  0x5d   : > { %2267 = vmatpush.bf16.msra.mxu3 %v2199_v11  ;;  %851 = vmatpush.bf16.msra.mxu1 %v2199_v11  ;;  %v599_v11 = vrot.slane %v539_v39, 4 }
  0x5e   : > { %v598_v12 = vsel %vm583_vm1, %v595_v6, %v597_v10 }
  0x60   : > { %2260 = vmatpush.bf16.msra.mxu2 %v2190_v15  ;;  %823 = vmatpush.bf16.msra.mxu0 %v2190_v15  ;;  %v600_v15 = vsel %vm583_vm1, %v597_v10, %v599_v11  ;;  %v2227_v10 = vld [vmem:[#allocation7 + $0x74] sm:$0xf] }
  0x61   : > { %2268 = vmatpush.bf16.msra.mxu3 %v2198_v16  ;;  %852 = vmatpush.bf16.msra.mxu1 %v2198_v16  ;;  %v620_v16 = vpack.c.bf16 %v600_v15, %v598_v12  ;;  %v2079_v15 = vld [vmem:[#allocation7 + $0x78] sm:$0xf0] }
  0x64   : > { %2261 = vmatpush.bf16.msra.mxu2 %v2189_v20  ;;  %824 = vmatpush.bf16.msra.mxu0 %v2189_v20 }
  0x65   : > { %2269 = vmatpush.bf16.msra.mxu3 %v2197_v21  ;;  %853 = vmatpush.bf16.msra.mxu1 %v2197_v21 }
  0x67   : > { %835 = vmatmul.bf16.vlgmr.msra.gmra.mxu2 %v615_v25  ;;  %825 = vmatmul.bf16.vlgmr.msra.gmra.mxu0 %v609_v34 }
  0x68   : > { %875 = vmatpush.bf16.msrb.mxu2 %v2212_v24  ;;  %864 = vmatmul.bf16.vlgmr.msra.gmra.mxu3 %v616_v26 }
  0x69   : > { %854 = vmatmul.bf16.vlgmr.msra.gmra.mxu1 %v610_v40 }
  0x6c   : > { %876 = vmatpush.bf16.msrb.mxu2 %v2211_v27 }
  0x70   : > { %877 = vmatpush.bf16.msrb.mxu2 %v2210_v37 }
  0x74   : > { %878 = vmatpush.bf16.msrb.mxu2 %v2209_v43 }
  0x77   : > { %840 = vmatmul.bf16.gmra.mxu2 %v618_v47  ;;  %830 = vmatmul.bf16.gmra.mxu0 %v612_v52 }
  0x78   : > { %879 = vmatpush.bf16.msrb.mxu2 %v2208_v46  ;;  %869 = vmatmul.bf16.gmra.mxu3 %v619_v48 }
  0x79   : > { %859 = vmatmul.bf16.gmra.mxu1 %v613_v56 }
  0x7c   : > { %880 = vmatpush.bf16.msrb.mxu2 %v2207_v49 }
  0x80   : > { %881 = vmatpush.bf16.msrb.mxu2 %v2206_v55 }
  0x84   : > { %882 = vmatpush.bf16.msrb.mxu2 %v2205_v60 }
  0x87   : > { %883 = vmatmul.bf16.vlgmr.msrb.gmra.mxu2 %v611_v63 }
  0x97   : > { %888 = vmatmul.bf16.gmra.mxu2 %v614_v4 }
  0xa7   : > { %893 = vmatmul.bf16.gmra.mxu2 %v617_v9  ;;  %v2228_v9 = vld [vmem:[#allocation7 + $0x74] sm:$0xf0] }
  0xa8   : > { %v2078_v12 = vor.u32 %v2228_v9, %v2077_v8  ;;  %v2029_v8 = vld [vmem:[#allocation7 + $0x10] sm:$0xf]  ;;  %v2216_v9 = vld [vmem:[#allocation7 + $0x14] sm:$0xf0] }
  0xaa   : > { %1088 = vmatpush.bf16.msrb.mxu3 %v2078_v12  ;;  %v2031_v12 = vld [vmem:[#allocation7 + $0x18] sm:$0xf0] }
  0xb7   : > { %898 = vmatmul.bf16.gmra.mxu2 %v620_v16  ;;  %v2069_v16 = vld [vmem:[#allocation7 + $0x60] sm:$0xf] }
  0xe4   : > { %v826_v13 = vpop.f32.mrf.mxu0 }
  0xe5   : > { %v827_v24 = vadd.f32 %v3007_v22, %v826_v13  ;;  %v2225_v13 = vld [vmem:[#allocation7 + $0x64] sm:$0xf] }
  0xe6   : > { %v855_v20 = vpop.f32.mrf.mxu1 }
  0xe7   : > { %v856_v27 = vadd.f32 %v855_v20, %v827_v24  ;;  %v2071_v20 = vld [vmem:[#allocation7 + $0x68] sm:$0xf0] }
  0xea   : > { %v836_v17 = vpop.f32.mrf.mxu2 }
  0xeb   : > { %v865_v44 = vpop.f32.mrf.mxu3  ;;  %v837_v50 = vadd.f32 %v3007_v22, %v836_v17  ;;  %v2226_v17 = vld [vmem:[#allocation7 + $0x64] sm:$0xf0] }
  0xec   : > { %v828_v21 = vpop.f32.mrf.mxu0 }
  0xed   : > { %v829_v26 = vadd.f32 %v3007_v22, %v828_v21  ;;  %v866_v54 = vadd.f32 %v865_v44, %v837_v50  ;;  %v2070_v21 = vor.u32 %v2226_v17, %v2069_v16  ;;  %v2220_v50 = vld [vmem:[#allocation7 + $0x34] sm:$0xf0]  ;;  %v2030_v16 = vor.u32 %v2216_v9, %v2029_v8 }
  0xee   : > { %v857_v23 = vpop.f32.mrf.mxu1 }
  0xef   : > { %v858_v29 = vadd.f32 %v857_v23, %v829_v26  ;;  %v2061_v26 = vld [vmem:[#allocation7 + $0x50] sm:$0xf]  ;;  %1089 = vmatpush.bf16.msrb.mxu3 %v2070_v21  ;;  %v2213_v21 = vld [vmem:[#allocation7 + $0x4] sm:$0xf] }
  0xf2   : > { %v838_v18 = vpop.f32.mrf.mxu2 }
  0xf3   : > { %v867_v52 = vpop.f32.mrf.mxu3  ;;  %v839_v55 = vadd.f32 %v3007_v22, %v838_v18 }
  0xf4   : > { %v831_v28 = vpop.f32.mrf.mxu0 }
  0xf5   : > { %v832_v38 = vadd.f32 %v3007_v22, %v831_v28  ;;  %v868_v58 = vadd.f32 %v867_v52, %v839_v55 }
  0xf6   : > { %v860_v32 = vpop.f32.mrf.mxu1 }
  0xf7   : > { %v861_v42 = vadd.f32 %v860_v32, %v832_v38 }
  0xfa   : > { %v841_v19 = vpop.f32.mrf.mxu2 }
  0xfb   : > { %v870_v0 = vpop.f32.mrf.mxu3  ;;  %v842_v1 = vadd.f32 %v3007_v22, %v841_v19  ;;  %v2082_v19 = vor.u32 %v2227_v10, %v2079_v15 }
  0xfc   : > { %v833_v37 = vpop.f32.mrf.mxu0 }
  0xfd   : > { %v834_v40 = vadd.f32 %v3007_v22, %v833_v37  ;;  %v871_v6 = vadd.f32 %v870_v0, %v842_v1  ;;  %1117 = vmatpush.bf16.msrb.mxu0 %v2082_v19  ;;  %v2217_v0 = vld [vmem:[#allocation7 + $0x24] sm:$0xf]  ;;  %v2039_v1 = vld [vmem:[#allocation7 + $0x28] sm:$0xf0]  ;;  %v2021_v19 = vld [vmem:[#allocation7] sm:$0xf] }
  0xfe   : > { %v862_v41 = vpop.f32.mrf.mxu1  ;;  %v2042_v7 = vor.u32 %v2217_v0, %v2039_v1 }
  0xff   : > { %v863_v43 = vadd.f32 %v862_v41, %v834_v40  ;;  %v2222_v40 = vld [vmem:[#allocation7 + $0x44] sm:$0xf0]  ;;  %v2221_v41 = vld [vmem:[#allocation7 + $0x44] sm:$0xf] }
 0x102   : > { %v3002_v14 = vpop.f32.mrf.mxu2 }
 0x103   : > { %v844_v23 = vadd.f32 %v3007_v22, %v3002_v14  ;;  %v872_v28 = vpop.f32.mrf.mxu3 }
 0x105   : > { %v873_v37 = vadd.f32 %v872_v28, %v844_v23  ;;  %v2023_v23 = vld [vmem:[#allocation7 + $0x8] sm:$0xf0] }
 0x106   : > { %v2026_v28 = vor.u32 %v2213_v21, %v2023_v23 }
 0x10a   : > { %v884_v25 = vpop.f32.mrf.mxu2 }
 0x10b   : > { %v885_v30 = vadd.f32 %v884_v25, %v856_v27  ;;  %v2074_v25 = vor.u32 %v2225_v13, %v2071_v20  ;;  %v2224_v27 = vld [vmem:[#allocation7 + $0x54] sm:$0xf0]  ;;  %v2214_v13 = vld [vmem:[#allocation7 + $0x4] sm:$0xf0] }
 0x10d   : > { %v3011_v34 = vmax.f32 %v885_v30, 0.0  ;;  %v2063_v30 = vld [vmem:[#allocation7 + $0x58] sm:$0xf0]  ;;  %1118 = vmatpush.bf16.msrb.mxu0 %v2074_v25 }
 0x112   : > { %v886_v31 = vpop.f32.mrf.mxu2 }
 0x113   : > { %v887_v33 = vadd.f32 %v886_v31, %v858_v29  ;;  %v2223_v29 = vld [vmem:[#allocation7 + $0x54] sm:$0xf]  ;;  %v2372_v31 = vpop.eup %2371 }
 0x114   : > { %v2066_v38 = vor.u32 %v2223_v29, %v2063_v30  ;;  %v926_v22 = vmul.f32 64.0, %v2372_v31  ;;  %vm930_vm2 = vweird.f32 %v2372_v31 }
 0x115   : > { %v3013_v35 = vmax.f32 %v887_v33, 0.0  ;;  %v2062_v33 = vor.u32 %v2224_v27, %v2061_v26  ;;  %v2022_v26 = vor.u32 %v2214_v13, %v2021_v19 }
 0x116   : > { %1119 = vmatpush.bf16.msrb.mxu0 %v2066_v38  ;;  %v927_v52 = vsub.f32 1.0, %v926_v22 }
 0x117   : > { %v1463_v36 = vpack.c.bf16 %v3013_v35, %v3011_v34  ;;  %v912_v57 = vadd.f32 %v3013_v35, %v3011_v34  ;;  %1090 = vmatpush.bf16.msrb.mxu3 %v2062_v33 }
 0x11a   : > { %v889_v39 = vpop.f32.mrf.mxu2 }
 0x11b   : > { %v890_v45 = vadd.f32 %v889_v39, %v861_v42  ;;  %v2053_v39 = vld [vmem:[#allocation7 + $0x40] sm:$0xf]  ;;  %v2055_v42 = vld [vmem:[#allocation7 + $0x48] sm:$0xf0] }
 0x11c   : > { %v2054_v44 = vor.u32 %v2222_v40, %v2053_v39 }
 0x11d   : > { %v3019_v48 = vmax.f32 %v890_v45, 0.0 }
 0x11e   : > { %1091 = vmatpush.bf16.msrb.mxu3 %v2054_v44 }
 0x11f   : > { %v913_v59 = vadd.f32 %v912_v57, %v3019_v48 }
 0x122   : > { %v891_v46 = vpop.f32.mrf.mxu2 }
 0x123   : > { %v892_v47 = vadd.f32 %v891_v46, %v863_v43  ;;  %v2058_v46 = vor.u32 %v2221_v41, %v2055_v42 }
 0x125   : > { %v3021_v49 = vmax.f32 %v892_v47, 0.0  ;;  %v2045_v47 = vld [vmem:[#allocation7 + $0x30] sm:$0xf]  ;;  %1120 = vmatpush.bf16.msrb.mxu0 %v2058_v46 }
 0x126   : > { %v2046_v57 = vor.u32 %v2220_v50, %v2045_v47 }
 0x127   : > { %v1464_v51 = vpack.c.bf16 %v3021_v49, %v3019_v48  ;;  %v914_v62 = vadd.f32 %v913_v59, %v3021_v49 }
 0x128   : > { %1092 = vmatpush.bf16.msrb.mxu3 %v2046_v57 }
 0x12a   : > { %v894_v53 = vpop.f32.mrf.mxu2 }
 0x12b   : > { %v895_v56 = vadd.f32 %v894_v53, %v866_v54  ;;  %v2219_v53 = vld [vmem:[#allocation7 + $0x34] sm:$0xf]  ;;  %v2047_v54 = vld [vmem:[#allocation7 + $0x38] sm:$0xf0] }
 0x12c   : > { %v2050_v59 = vor.u32 %v2219_v53, %v2047_v54 }
 0x12d   : > { %v3030_v60 = vmax.f32 %v895_v56, 0.0 }
 0x12e   : > { %1121 = vmatpush.bf16.msrb.mxu0 %v2050_v59 }
 0x12f   : > { %v915_v2 = vadd.f32 %v914_v62, %v3030_v60  ;;  %v2218_v62 = vld [vmem:[#allocation7 + $0x24] sm:$0xf0] }
 0x132   : > { %v896_v61 = vpop.f32.mrf.mxu2  ;;  %1122 = vmatpush.bf16.msrb.mxu0 %v2042_v7 }
 0x133   : > { %v897_v63 = vadd.f32 %v896_v61, %v868_v58  ;;  %v2037_v61 = vld [vmem:[#allocation7 + $0x20] sm:$0xf] }
 0x135   : > { %v3035_v3 = vmax.f32 %v897_v63, 0.0  ;;  %v928_v63 = vmul.f32 %v2372_v31, %v927_v52 }
 0x137   : > { %v916_v4 = vadd.f32 %v915_v2, %v3035_v3  ;;  %v1465_v5 = vpack.c.bf16 %v3035_v3, %v3030_v60  ;;  %v929_v10 = vadd.f32 %v2372_v31, %v928_v63 }
 0x139   : > { %v931_v20 = vsel %vm930_vm2, %v2372_v31, %v929_v10 }
 0x13a   : > { %v899_v11 = vpop.f32.mrf.mxu2 }
 0x13b   : > { %v900_v18 = vadd.f32 %v899_v11, %v871_v6  ;;  %v2215_v11 = vld [vmem:[#allocation7 + $0x14] sm:$0xf] }
 0x13d   : > { %v3042_v24 = vmax.f32 %v900_v18, 0.0  ;;  %v2034_v18 = vor.u32 %v2215_v11, %v2031_v12 }
 0x13f   : > { %v917_v32 = vadd.f32 %v916_v4, %v3042_v24  ;;  %v2038_v4 = vor.u32 %v2218_v62, %v2037_v61  ;;  %1123 = vmatpush.bf16.msrb.mxu0 %v2034_v18 }
 0x141   : > { %1093 = vmatpush.bf16.msrb.mxu3 %v2038_v4 }
 0x142   : > { %v901_v14 = vpop.f32.mrf.mxu2 }
 0x143   : > { %v902_v43 = vadd.f32 %v901_v14, %v873_v37  ;;  %1124 = vmatpush.bf16.msrb.mxu0 %v2026_v28  ;;  %v2251_v28 = vld [vmem:[#allocation12 + $0x30] sm:$0xff] }
 0x145   : > { %v3045_v45 = vmax.f32 %v902_v43, 0.0  ;;  %1094 = vmatpush.bf16.msrb.mxu3 %v2030_v16 }
 0x147   : > { %v918_v55 = vadd.f32 %v917_v32, %v3045_v45  ;;  %v1466_v56 = vpack.c.bf16 %v3045_v45, %v3042_v24 }
 0x149   : > { %v919_v58 = vrot.slane %v918_v55, 4  ;;  %1095 = vmatpush.bf16.msrb.mxu3 %v2022_v26 }
 0x14b   : > { %v920_v2 = vadd.f32 %v919_v58, %v918_v55 }
 0x14d   : > { %v921_v6 = vrot.slane %v920_v2, 2 }
 0x14f   : > { %v922_v15 = vadd.f32 %v921_v6, %v920_v2 }
 0x151   : > { %v923_v17 = vrot.slane %v922_v15, 1 }
 0x153   : > { %v924_v25 = vadd.f32 %v923_v17, %v922_v15 }
 0x155   : > { %v932_v27 = vmul.f32 %v931_v20, %v924_v25 }
 0x157   : > { %v933_v29 = vsub.f32 %v3011_v34, %v932_v27  ;;  %v934_v30 = vsub.f32 %v3013_v35, %v932_v27  ;;  %v935_v32 = vsub.f32 %v3019_v48, %v932_v27  ;;  %v937_v33 = vsub.f32 %v3030_v60, %v932_v27 }
 0x158   : > { %v938_v37 = vsub.f32 %v3035_v3, %v932_v27  ;;  %v939_v31 = vsub.f32 %v3042_v24, %v932_v27  ;;  %v936_v38 = vsub.f32 %v3021_v49, %v932_v27  ;;  %v940_v46 = vsub.f32 %v3045_v45, %v932_v27  ;;  %v2252_v27 = vld [vmem:[#allocation12 + $0x38] sm:$0xff] }
 0x159   : > { %v941_v39 = vmul.f32 %v933_v29, %v933_v29  ;;  %v942_v40 = vmul.f32 %v934_v30, %v934_v30  ;;  %v943_v14 = vmul.f32 %v935_v32, %v935_v32  ;;  %v945_v43 = vmul.f32 %v937_v33, %v937_v33  ;;  %1531 = vmatpush.bf16.msra.mxu0 %v2252_v27 }
 0x15a   : > { %v944_v41 = vmul.f32 %v936_v38, %v936_v38  ;;  %v946_v47 = vmul.f32 %v938_v37, %v938_v37  ;;  %v947_v52 = vmul.f32 %v939_v31, %v939_v31  ;;  %v948_v54 = vmul.f32 %v940_v46, %v940_v46 }
 0x15b   : > { %v949_v22 = vadd.f32 %v942_v40, %v941_v39  ;;  %v2250_v39 = vld [vmem:[#allocation12 + $0x28] sm:$0xff] }
 0x15d   : > { %v950_v42 = vadd.f32 %v949_v22, %v943_v14  ;;  %1532 = vmatpush.bf16.msra.mxu0 %v2251_v28  ;;  %v544_v28 = vld [vmem:[%s2869_s25 + $0x20] sm:$0xff] }
 0x15f   : > { %v951_v44 = vadd.f32 %v950_v42, %v944_v41 }
 0x161   : > { %v952_v50 = vadd.f32 %v951_v44, %v945_v43  ;;  %1533 = vmatpush.bf16.msra.mxu0 %v2250_v39  ;;  %v545_v39 = vld [vmem:[%s2869_s25 + $0x28] sm:$0xff] }
 0x163   : > { %v953_v53 = vadd.f32 %v952_v50, %v946_v47 }
 0x165   : > { %v954_v55 = vadd.f32 %v953_v53, %v947_v52 }
 0x167   : > { %v955_v57 = vadd.f32 %v954_v55, %v948_v54 }
 0x169   : > { %v956_v58 = vrot.slane %v955_v57, 4 }
 0x16b   : > { %v957_v59 = vadd.f32 %v956_v58, %v955_v57 }
 0x16d   : > { %v958_v61 = vrot.slane %v957_v59, 2 }
 0x16f   : > { %v959_v62 = vadd.f32 %v958_v61, %v957_v59 }
 0x171   : > { %v960_v63 = vrot.slane %v959_v62, 1 }
 0x173   : > { %v961_v0 = vadd.f32 %v960_v63, %v959_v62 }
 0x175   : > { %v962_v1 = vmul.f32 %v961_v0, %v931_v20  ;;  %v2236_v0 = vld [vmem:[#allocation9 + $0x38] sm:$0xff] }
 0x176   : > { %1218 = vmatpush.bf16.msrb.mxu1 %v2236_v0  ;;  %v1266_v0 = vld [vmem:[%s3274_s3 + $0x30] sm:$0xff] }
 0x177   : > { %v963_v2 = vadd.f32 1e-05, %v962_v1  ;;  %v2235_v1 = vld [vmem:[#allocation9 + $0x30] sm:$0xff] }
 0x179   : > { %2373 = vrsqrt.f32 %v963_v2  ;;  %vm970_vm4 = vweird.f32 %v963_v2 }
 0x17a   : > { %1219 = vmatpush.bf16.msrb.mxu1 %v2235_v1 }
 0x17f   : > { %v2374_v4 = vpop.eup %2373 }
 0x180   : > { %v965_v6 = vmul.f32 %v2374_v4, %v963_v2  ;;  %vm971_vm3 = vweird.f32 %v2374_v4 }
 0x181   : > { %vm972_vm5 = vmor %vm970_vm4, %vm971_vm3 }
 0x182   : > { %v966_v7 = vmul.f32 %v2374_v4, %v965_v6 }
 0x184   : > { %v967_v8 = vmul.f32 0.5, %v966_v7  ;;  %v2233_v7 = vld [vmem:[#allocation9 + $0x20] sm:$0xff] }
 0x186   : > { %v968_v9 = vsub.f32 1.5, %v967_v8 }
 0x188   : > { %v969_v10 = vmul.f32 %v2374_v4, %v968_v9 }
 0x18a   : > { %v973_v11 = vsel %vm972_vm5, %v2374_v4, %v969_v10  ;;  %v2234_v4 = vld [vmem:[#allocation9 + $0x28] sm:$0xff] }
 0x18b   : > { %v974_v12 = vmul.f32 %v973_v11, %v933_v29  ;;  %v975_v15 = vmul.f32 %v973_v11, %v934_v30  ;;  %v976_v16 = vmul.f32 %v973_v11, %v935_v32  ;;  %v977_v17 = vmul.f32 %v973_v11, %v936_v38  ;;  %v2249_v29 = vld [vmem:[#allocation12 + $0x20] sm:$0xff]  ;;  %v2248_v30 = vld [vmem:[#allocation12 + $0x18] sm:$0xff]  ;;  %v2247_v32 = vld [vmem:[#allocation12 + $0x10] sm:$0xff]  ;;  %1220 = vmatpush.bf16.msrb.mxu1 %v2234_v4 }
 0x18c   : > { %v978_v18 = vmul.f32 %v973_v11, %v937_v33  ;;  %v979_v19 = vmul.f32 %v973_v11, %v938_v37  ;;  %v980_v13 = vmul.f32 %v973_v11, %v939_v31  ;;  %v981_v20 = vmul.f32 %v973_v11, %v940_v46  ;;  %1534 = vmatpush.bf16.msra.mxu0 %v2249_v29  ;;  %v2246_v33 = vld [vmem:[#allocation12 + $0x8] sm:$0xff]  ;;  %v2245_v37 = vld [vmem:[#allocation12] sm:$0xff]  ;;  %v2232_v11 = vld [vmem:[#allocation9 + $0x18] sm:$0xff] }
 0x18d   : > { %v982_v21 = vpack.c.bf16 %v975_v15, %v974_v12  ;;  %v983_v23 = vpack.c.bf16 %v977_v17, %v976_v16  ;;  %v1002_v38 = vld [vmem:[%s3278_s7] sm:$0x3]  ;;  %v2231_v12 = vld [vmem:[#allocation9 + $0x10] sm:$0xff]  ;;  %v2230_v15 = vld [vmem:[#allocation9 + $0x8] sm:$0xff]  ;;  %v1148_v29 = vpack.c.bf16 %v545_v39, %v544_v28 }
 0x18e   : > { %v984_v25 = vpack.c.bf16 %v979_v19, %v978_v18  ;;  %v985_v26 = vpack.c.bf16 %v981_v20, %v980_v13  ;;  %v1005_v40 = vperm.slane %v1002_v38, 1  ;;  %v1004_v53 = vperm.slane %v1002_v38, 0  ;;  %v2229_v18 = vld [vmem:[#allocation9] sm:$0xff]  ;;  %v541_v13 = vld [vmem:[%s2869_s25 + $0x8] sm:$0xff]  ;;  %v547_v38 = vld [vmem:[%s2869_s25 + $0x38] sm:$0xff] }
 0x18f   : > { %1096 = vmatmul.bf16.vlgmr.msrb.gmra.mxu3 %v982_v21  ;;  %1125 = vmatmul.bf16.vlgmr.msrb.gmra.mxu0 %v982_v21  ;;  %v540_v19 = vld [vmem:[%s2869_s25] sm:$0xff] }
 0x190   : > { %1535 = vmatpush.bf16.msra.mxu0 %v2248_v30  ;;  %1221 = vmatpush.bf16.msrb.mxu1 %v2233_v7  ;;  %v1146_v21 = vpack.c.bf16 %v541_v13, %v540_v19  ;;  %v1255_v30 = vlaneseq  ;;  %v1267_v7 = vld [vmem:[%s3274_s3 + $0x38] sm:$0xff] }
 0x194   : > { %1536 = vmatpush.bf16.msra.mxu0 %v2247_v32  ;;  %1222 = vmatpush.bf16.msrb.mxu1 %v2232_v11  ;;  %v1256_v32 = vand.u32 127, %v1255_v30 }
 0x198   : > { %1537 = vmatpush.bf16.msra.mxu0 %v2246_v33  ;;  %1223 = vmatpush.bf16.msrb.mxu1 %v2231_v12  ;;  %v3081_v33 = vstv %s530_s11  ;;  %s1778_s11 = scalar_lea.hbm %s3284_s13, %s2253_s10 }
 0x199   : > { %vm1258_vm6 = vcmp.lt.s32.totalorder %v1256_v32, %v3081_v33  ;;  %s1781_s17 = sshll.u32 %s1778_s11, 4  ;;  %s1782_s17 = int_to_ptr.hbm [resolvable:$true] %s1781_s17 }
 0x19a   : > { %s2592_s18 = sshra.s32 %s1782_s17, 4  ;;  %s2593_s18 = int_to_ptr.hbm [resolvable:$true] %s2592_s18 }
 0x19b   : > { %s2594_s21 = scalar_lea.hbm %s2593_s18, 64  ;;  %p2599_p2 = scmp.lt.s32.totalorder %s2593_s18, %s3284_s13 }
 0x19c   : > { %1538 = vmatpush.bf16.msra.mxu0 %v2245_v37  ;;  %1224 = vmatpush.bf16.msrb.mxu1 %v2230_v15  ;;  %v1260_v37 = vld [vmem:[%s3274_s3] sm:$0xff]  ;;  %p2595_p4 = scmp.ne.s32.totalorder %s2593_s18, %s2594_s21  ;;  %p2600_p9 = scmp.lt.s32.totalorder %s2598_s26, %s2594_s21 }
 0x19e   : > { %p2596_p8 = pnand %p2595_p4, %p2830_p3  ;;  %p2601_p10 = por %p2600_p9, %p2599_p2 }
 0x19f   : > { %1101 = vmatmul.bf16.gmra.mxu3 %v983_v23  ;;  %1130 = vmatmul.bf16.gmra.mxu0 %v983_v23 }
 0x1a0   : > { %1225 = vmatpush.bf16.msrb.mxu1 %v2229_v18  ;;  %p2597_p11 = pneg %p2596_p8 }
 0x1a2   : > { %p2602_p12 = pnand %p2601_p10, %p2597_p11 }
 0x1a3   : > { %1226 = vmatmul.bf16.vlgmr.msrb.gmra.mxu1 %v1146_v21 }
 0x1af   : > { %1106 = vmatmul.bf16.gmra.mxu3 %v984_v25  ;;  %1135 = vmatmul.bf16.gmra.mxu0 %v984_v25  ;;  %v542_v25 = vld [vmem:[%s2869_s25 + $0x10] sm:$0xff] }
 0x1bf   : > { %1111 = vmatmul.bf16.gmra.mxu3 %v985_v26  ;;  %1140 = vmatmul.bf16.gmra.mxu0 %v985_v26  ;;  %v543_v26 = vld [vmem:[%s2869_s25 + $0x18] sm:$0xff] }
 0x1c0   : > { %v1147_v27 = vpack.c.bf16 %v543_v26, %v542_v25  ;;  %v2369_v25 = vld [vmem:[%s3280_s9] ss:$0 sm:$0xff] }
 0x1c2   : > { %1231 = vmatmul.bf16.gmra.mxu1 %v1147_v27 }
 0x1cf   : > { %1539 = vmatmul.bf16.vlgmr.msra.gmra.mxu0 %v1463_v36 }
 0x1d2   : > { %1236 = vmatmul.bf16.gmra.mxu1 %v1148_v29 }
 0x1df   : > { %1544 = vmatmul.bf16.gmra.mxu0 %v1464_v51 }
 0x1ef   : > { %1549 = vmatmul.bf16.gmra.mxu0 %v1465_v5 }
 0x1ff   : > { %1554 = vmatmul.bf16.gmra.mxu0 %v1466_v56 }
 0x20c   : > { %v1126_v31 = vpop.f32.mrf.mxu0 }
 0x20d   : > { %v1127_v35 = vadd.f32 %v1126_v31, %v1005_v40  ;;  %v546_v31 = vld [vmem:[%s2869_s25 + $0x30] sm:$0xff] }
 0x212   : > { %v1097_v45 = vpop.f32.mrf.mxu3 }
 0x213   : > { %v1098_v55 = vadd.f32 %v1097_v45, %v1004_v53 }
 0x214   : > { %v1128_v34 = vpop.f32.mrf.mxu0 }
 0x215   : > { %v1129_v36 = vadd.f32 %v1128_v34, %v1005_v40 }
 0x217   : > { %v1251_v14 = vpack.c.bf16 %v1129_v36, %v1127_v35  ;;  %v2666_v35 = vmov -1e+09  }
 0x218   : > { %v1259_v36 = vsel %vm1258_vm6, 0.0, %v2666_v35 }
 0x21a   : > { %v1099_v44 = vpop.f32.mrf.mxu3 }
 0x21b   : > { %v1100_v54 = vadd.f32 %v1099_v44, %v1004_v53 }
 0x21c   : > { %v1131_v48 = vpop.f32.mrf.mxu0 }
 0x21d   : > { %v1132_v47 = vadd.f32 %v1131_v48, %v1005_v40  ;;  %v1247_v57 = vpack.c.bf16 %v1100_v54, %v1098_v55 }
 0x220   : > { %v1227_v12 = vpop.f32.mrf.mxu1 }
 0x222   : > { %v1102_v52 = vpop.f32.mrf.mxu3 }
 0x223   : > { %v1103_v62 = vadd.f32 %v1102_v52, %v1004_v53  ;;  %v1264_v52 = vld [vmem:[%s3274_s3 + $0x20] sm:$0xff] }
 0x224   : > { %v1133_v49 = vpop.f32.mrf.mxu0 }
 0x225   : > { %v1134_v46 = vadd.f32 %v1133_v49, %v1005_v40 }
 0x227   : > { %v1252_v50 = vpack.c.bf16 %v1134_v46, %v1132_v47 }
 0x228   : > { %v1229_v15 = vpop.f32.mrf.mxu1 }
 0x22a   : > { %v1104_v58 = vpop.f32.mrf.mxu3 }
 0x22b   : > { %v1105_v61 = vadd.f32 %v1104_v58, %v1004_v53  ;;  %v1265_v58 = vld [vmem:[%s3274_s3 + $0x28] sm:$0xff] }
 0x22c   : > { %v1136_v51 = vpop.f32.mrf.mxu0 }
 0x22d   : > { %v1137_v42 = vadd.f32 %v1136_v51, %v1005_v40  ;;  %v1248_v63 = vpack.c.bf16 %v1105_v61, %v1103_v62  ;;  %v1261_v51 = vld [vmem:[%s3274_s3 + $0x8] sm:$0xff] }
 0x232   : > { %v1107_v59 = vpop.f32.mrf.mxu3 }
 0x233   : > { %v1108_v8 = vadd.f32 %v1107_v59, %v1004_v53 }
 0x234   : > { %v1138_v22 = vpop.f32.mrf.mxu0 }
 0x235   : > { %v1139_v56 = vadd.f32 %v1138_v22, %v1005_v40 }
 0x237   : > { %v1253_v43 = vpack.c.bf16 %v1139_v56, %v1137_v42 }
 0x23a   : > { %v1109_v2 = vpop.f32.mrf.mxu3 }
 0x23b   : > { %v1110_v6 = vadd.f32 %v1109_v2, %v1004_v53 }
 0x23c   : > { %v1141_v60 = vpop.f32.mrf.mxu0 }
 0x23d   : > { %v1142_v5 = vadd.f32 %v1141_v60, %v1005_v40  ;;  %v1249_v10 = vpack.c.bf16 %v1110_v6, %v1108_v8 }
 0x242   : > { %v1112_v9 = vpop.f32.mrf.mxu3 }
 0x243   : > { %v1113_v20 = vadd.f32 %v1112_v9, %v1004_v53 }
 0x244   : > { %v1143_v3 = vpop.f32.mrf.mxu0 }
 0x245   : > { %v1144_v41 = vadd.f32 %v1143_v3, %v1005_v40  ;;  %v1149_v40 = vpack.c.bf16 %v547_v38, %v546_v31 }
 0x247   : > { %v1254_v24 = vpack.c.bf16 %v1144_v41, %v1142_v5  ;;  %1241 = vmatmul.bf16.gmra.mxu1 %v1149_v40  ;;  %v1262_v41 = vld [vmem:[%s3274_s3 + $0x10] sm:$0xff] }
 0x249   : > { %1272 = vmatpush.bf16.xpose.msra.mxu2 %v1254_v24 }
 0x24a   : > { %v1114_v16 = vpop.f32.mrf.mxu3 }
 0x24b   : > { %v1115_v17 = vadd.f32 %v1114_v16, %v1004_v53  ;;  %v1232_v16 = vpop.f32.mrf.mxu1 }
 0x24d   : > { %v1250_v23 = vpack.c.bf16 %v1115_v17, %v1113_v20 }
 0x251   : > { %1273 = vmatpush.bf16.xpose.msra.mxu2 %v1253_v43  ;;  %v1263_v43 = vld [vmem:[%s3274_s3 + $0x18] sm:$0xff] }
 0x253   : > { %v1234_v17 = vpop.f32.mrf.mxu1 }
 0x259   : > { %1274 = vmatpush.bf16.xpose.msra.mxu2 %v1252_v50 }
 0x25b   : > { %v1237_v18 = vpop.f32.mrf.mxu1 }
 0x25c   : > { %v1238_v31 = vadd.f32 %v2369_v25, %v1237_v18 }
 0x261   : > { %1275 = vmatpush.bf16.xpose.msra.mxu2 %v1251_v14 }
 0x263   : > { %v1239_v19 = vpop.f32.mrf.mxu1 }
 0x264   : > { %v1240_v38 = vadd.f32 %v2369_v25, %v1239_v19 }
 0x268   : > { %1276 = vmatmul.bf16.vlgmr.msra.gmra.mxu2 %v1247_v57 }
 0x278   : > { %1281 = vmatmul.bf16.gmra.mxu2 %v1248_v63 }
 0x288   : > { %1286 = vmatmul.bf16.gmra.mxu2 %v1249_v10 }
 0x298   : > { %1291 = vmatmul.bf16.gmra.mxu2 %v1250_v23 }
 0x2c4   : > { %v1242_v23 = vpop.f32.mrf.mxu1 }
 0x2c5   : > { %v1243_v32 = vadd.f32 %v2369_v25, %v1242_v23 }
 0x2eb   : > { %v1277_v34 = vpop.f32.mrf.mxu2 }
 0x2ec   : > { %v1278_v14 = vadd.f32 %v1277_v34, %v1260_v37  ;;  %v1244_v37 = vpop.f32.mrf.mxu1 }
 0x2ed   : > { %v1245_v40 = vadd.f32 %v2369_v25, %v1244_v37  ;;  %v2242_v37 = vld [vmem:[#allocation10 + $0x28] sm:$0xff] }
 0x2ee   : > { %v1297_v48 = vadd.f32 %v1278_v14, %v1259_v36  ;;  %v1233_v14 = vadd.f32 %v2369_v25, %v1232_v16 }
 0x2ef   : > { %v1401_v35 = vpack.c.bf16 %v1245_v40, %v1243_v32  ;;  %v2243_v32 = vld [vmem:[#allocation10 + $0x30] sm:$0xff] }
 0x2f0   : > { %v1306_v49 = vsel %vm1305_vm7, %v1297_v48, -inf }
 0x2f1   : > { %1307 = vmax.xlane.f32.xlu0 %v1306_v49  ;;  %v1400_v49 = vpack.c.bf16 %v1240_v38, %v1238_v31  ;;  %1418 = vmatpush.bf16.msra.mxu3 %v1401_v35  ;;  %v2241_v38 = vld [vmem:[#allocation10 + $0x20] sm:$0xff] }
 0x2f3   : > { %v1279_v22 = vpop.f32.mrf.mxu2 }
 0x2f4   : > { %v1280_v60 = vadd.f32 %v1279_v22, %v1261_v51 }
 0x2f5   : > { %1419 = vmatpush.bf16.msra.mxu3 %v1400_v49 }
 0x2f6   : > { %v1298_v3 = vadd.f32 %v1280_v60, %v1259_v36 }
 0x2f8   : > { %v1309_v5 = vsel %vm1305_vm7, %v1298_v3, -inf }
 0x2f9   : > { %1310 = vmax.xlane.f32.xlu0 %v1309_v5  ;;  %v1230_v5 = vadd.f32 %v2369_v25, %v1229_v15 }
 0x2fb   : > { %v1282_v24 = vpop.f32.mrf.mxu2 }
 0x2fc   : > { %v1283_v45 = vadd.f32 %v1282_v24, %v1262_v41 }
 0x2fe   : > { %v3097_v56 = vadd.f32 %v1283_v45, %v1259_v36 }
 0x300   : > { %v1312_v42 = vsel %vm1305_vm7, %v3097_v56, -inf }
 0x301   : > { %1313 = vmax.xlane.f32.xlu1 %v1312_v42 }
 0x303   : > { %v1284_v44 = vpop.f32.mrf.mxu2 }
 0x304   : > { %v1285_v46 = vadd.f32 %v1284_v44, %v1263_v43 }
 0x306   : > { %v3104_v47 = vadd.f32 %v1285_v46, %v1259_v36 }
 0x308   : > { %v1315_v50 = vsel %vm1305_vm7, %v3104_v47, -inf }
 0x309   : > { %1316 = vmax.xlane.f32.xlu1 %v1315_v50 }
 0x30b   : > { %v1287_v53 = vpop.f32.mrf.mxu2 }
 0x30c   : > { %v1288_v54 = vadd.f32 %v1287_v53, %v1264_v52 }
 0x30e   : > { %v3111_v55 = vadd.f32 %v1288_v54, %v1259_v36 }
 0x310   : > { %v1318_v57 = vsel %vm1305_vm7, %v3111_v55, -inf }
 0x311   : > { %1319 = vmax.xlane.f32.xlu2 %v1318_v57 }
 0x313   : > { %v1289_v59 = vpop.f32.mrf.mxu2 }
 0x314   : > { %v1290_v61 = vadd.f32 %v1289_v59, %v1265_v58 }
 0x316   : > { %v3118_v62 = vadd.f32 %v1290_v61, %v1259_v36 }
 0x318   : > { %v1321_v63 = vsel %vm1305_vm7, %v3118_v62, -inf }
 0x319   : > { %1322 = vmax.xlane.f32.xlu2 %v1321_v63 }
 0x31b   : > { %v1292_v1 = vpop.f32.mrf.mxu2 }
 0x31c   : > { %v1293_v2 = vadd.f32 %v1292_v1, %v1266_v0 }
 0x31e   : > { %v3125_v4 = vadd.f32 %v1293_v2, %v1259_v36 }
 0x320   : > { %v1324_v6 = vsel %vm1305_vm7, %v3125_v4, -inf }
 0x321   : > { %1325 = vmax.xlane.f32.xlu0 %v1324_v6 }
 0x323   : > { %v1294_v8 = vpop.f32.mrf.mxu2 }
 0x324   : > { %v1295_v9 = vadd.f32 %v1294_v8, %v1267_v7 }
 0x326   : > { %v3132_v10 = vadd.f32 %v1295_v9, %v1259_v36 }
 0x328   : > { %v1327_v11 = vsel %vm1305_vm7, %v3132_v10, -inf }
 0x329   : > { %1328 = vmax.xlane.f32.xlu1 %v1327_v11 }
 0x364   : > { %v1308_v13 = vpop.xlane.xlu0 %1307 }
 0x365   : > { %v1330_v20 = vsub.f32 %v1297_v48, %v1308_v13  ;;  %v1235_v48 = vadd.f32 %v2369_v25, %v1234_v17 }
 0x367   : > { %v1338_v21 = vmul.f32 1.442695, %v1330_v20  ;;  %v1399_v41 = vpack.c.bf16 %v1235_v48, %v1233_v14  ;;  %v2240_v14 = vld [vmem:[#allocation10 + $0x18] sm:$0xff] }
 0x369   : > { %2375 = vpow2.f32 %v1338_v21  ;;  %1420 = vmatpush.bf16.msra.mxu3 %v1399_v41  ;;  %v2239_v41 = vld [vmem:[#allocation10 + $0x10] sm:$0xff] }
 0x36c   : > { %v1311_v26 = vpop.xlane.xlu0 %1310 }
 0x36d   : > { %v1331_v27 = vsub.f32 %v1298_v3, %v1311_v26  ;;  %v1228_v3 = vadd.f32 %v2369_v25, %v1227_v12 }
 0x36f   : > { %v3139_v28 = vpop.eup %2375  ;;  %v1340_v39 = vmul.f32 1.442695, %v1331_v27  ;;  %v1398_v42 = vpack.c.bf16 %v1230_v5, %v1228_v3 }
 0x370   : > { %v1354_v29 = vsel %vm1305_vm7, %v3139_v28, 0.0 }
 0x371   : > { %2377 = vpow2.f32 %v1340_v39  ;;  %1355 = vadd.xlane.f32.xlu2 %v1354_v29  ;;  %1421 = vmatpush.bf16.msra.mxu3 %v1398_v42  ;;  %v2244_v29 = vld [vmem:[#allocation10 + $0x38] sm:$0xff] }
 0x372   : > { %1608 = vmatpush.bf16.msra.mxu1 %v2244_v29 }
 0x374   : > { %v1314_v34 = vpop.xlane.xlu1 %1313 }
 0x375   : > { %v1332_v36 = vsub.f32 %v3097_v56, %v1314_v34 }
 0x376   : > { %1609 = vmatpush.bf16.msra.mxu1 %v2243_v32 }
 0x377   : > { %v2378_v51 = vpop.eup %2377  ;;  %v1342_v22 = vmul.f32 1.442695, %v1332_v36 }
 0x378   : > { %v1357_v60 = vsel %vm1305_vm7, %v2378_v51, 0.0 }
 0x379   : > { %2379 = vpow2.f32 %v1342_v22  ;;  %1358 = vadd.xlane.f32.xlu0 %v1357_v60 }
 0x37a   : > { %1610 = vmatpush.bf16.msra.mxu1 %v2242_v37 }
 0x37c   : > { %v1317_v24 = vpop.xlane.xlu1 %1316 }
 0x37d   : > { %v1333_v45 = vsub.f32 %v3104_v47, %v1317_v24  ;;  %v2238_v24 = vld [vmem:[#allocation10 + $0x8] sm:$0xff] }
 0x37e   : > { %1611 = vmatpush.bf16.msra.mxu1 %v2241_v38 }
 0x37f   : > { %v2380_v56 = vpop.eup %2379  ;;  %v1344_v43 = vmul.f32 1.442695, %v1333_v45  ;;  %v2237_v45 = vld [vmem:[#allocation10] sm:$0xff] }
 0x380   : > { %v1360_v44 = vsel %vm1305_vm7, %v2380_v56, 0.0 }
 0x381   : > { %2381 = vpow2.f32 %v1344_v43  ;;  %1361 = vadd.xlane.f32.xlu1 %v1360_v44 }
 0x382   : > { %1612 = vmatpush.bf16.msra.mxu1 %v2240_v14 }
 0x384   : > { %v1320_v46 = vpop.xlane.xlu2 %1319 }
 0x385   : > { %v1334_v50 = vsub.f32 %v3111_v55, %v1320_v46 }
 0x386   : > { %1613 = vmatpush.bf16.msra.mxu1 %v2239_v41 }
 0x387   : > { %v2382_v52 = vpop.eup %2381  ;;  %v1346_v53 = vmul.f32 1.442695, %v1334_v50 }
 0x388   : > { %v1363_v54 = vsel %vm1305_vm7, %v2382_v52, 0.0 }
 0x389   : > { %2383 = vpow2.f32 %v1346_v53  ;;  %1364 = vadd.xlane.f32.xlu2 %v1363_v54 }
 0x38a   : > { %1614 = vmatpush.bf16.msra.mxu1 %v2238_v24 }
 0x38c   : > { %v1323_v57 = vpop.xlane.xlu2 %1322 }
 0x38d   : > { %v1335_v47 = vsub.f32 %v3118_v62, %v1323_v57 }
 0x38e   : > { %1615 = vmatpush.bf16.msra.mxu1 %v2237_v45 }
 0x38f   : > { %v2384_v58 = vpop.eup %2383  ;;  %v1348_v59 = vmul.f32 1.442695, %v1335_v47 }
 0x390   : > { %v1366_v61 = vsel %vm1305_vm7, %v2384_v58, 0.0 }
 0x391   : > { %2385 = vpow2.f32 %v1348_v59  ;;  %1367 = vadd.xlane.f32.xlu0 %v1366_v61  ;;  %v1540_v59 = vpop.f32.mrf.mxu0  ;;  %v3162_v61 = vshrl.u32 %v1255_v30, 7 }
 0x393   : > { %vm1658_vm8 = vcmp.lt.s32.totalorder %v3162_v61, %v3081_v33  ;;  %v1653_v32 = vadd.s32 24, %v3162_v61 }
 0x394   : > { %v1326_v63 = vpop.xlane.xlu0 %1325 }
 0x395   : > { %v1336_v0 = vsub.f32 %v3125_v4, %v1326_v63  ;;  %vm1661_vm12 = vcmp.lt.s32.totalorder %v1653_v32, %v3081_v33 }
 0x397   : > { %v2386_v1 = vpop.eup %2385  ;;  %v1350_v55 = vmul.f32 1.442695, %v1336_v0  ;;  %v3167_v0 = vld [vmem:[%s3283_s12] ss:$0 sm:$0xff] }
 0x398   : > { %v1369_v2 = vsel %vm1305_vm7, %v2386_v1, 0.0 }
 0x399   : > { %2387 = vpow2.f32 %v1350_v55  ;;  %1370 = vadd.xlane.f32.xlu1 %v1369_v2  ;;  %v1542_v63 = vpop.f32.mrf.mxu0  ;;  %v1651_v2 = vadd.s32 8, %v3162_v61 }
 0x39b   : > { %vm1659_vm9 = vcmp.lt.s32.totalorder %v1651_v2, %v3081_v33 }
 0x39c   : > { %v1329_v6 = vpop.xlane.xlu1 %1328 }
 0x39d   : > { %v1337_v7 = vsub.f32 %v3132_v10, %v1329_v6  ;;  %v2667_v6 = vmov 0.0  }
 0x39f   : > { %v2388_v8 = vpop.eup %2387  ;;  %v1352_v62 = vmul.f32 1.442695, %v1337_v7  ;;  %v1666_v7 = vsel %vm1658_vm8, 1.0, %v2667_v6 }
 0x3a0   : > { %v1372_v9 = vsel %vm1305_vm7, %v2388_v8, 0.0 }
 0x3a1   : > { %2389 = vpow2.f32 %v1352_v62  ;;  %1373 = vadd.xlane.f32.xlu2 %v1372_v9  ;;  %v1724_v62 = vrot.slane %v1666_v7, 6  ;;  %v1545_v9 = vpop.f32.mrf.mxu0 }
 0x3a7   : > { %v2390_v11 = vpop.eup %2389 }
 0x3a8   : > { %v1375_v12 = vsel %vm1305_vm7, %v2390_v11, 0.0 }
 0x3a9   : > { %1376 = vadd.xlane.f32.xlu0 %v1375_v12 }
 0x3e4   : > { %v1356_v4 = vpop.xlane.xlu2 %1355 }
 0x3e5   : > { %2391 = vrcp.f32 %v1356_v4 }
 0x3eb   : > { %v2392_v16 = vpop.eup %2391 }
 0x3ec   : > { %v1359_v15 = vpop.xlane.xlu0 %1358  ;;  %v1386_v18 = vmul.f32 %v2392_v16, %v3139_v28 }
 0x3ed   : > { %2393 = vrcp.f32 %v1359_v15  ;;  %v1667_v15 = vsel %vm1659_vm9, 1.0, %v2667_v6 }
 0x3f3   : > { %v2394_v17 = vpop.eup %2393 }
 0x3f4   : > { %v1387_v19 = vmul.f32 %v2394_v17, %v2378_v51  ;;  %v1362_v13 = vpop.xlane.xlu1 %1361 }
 0x3f5   : > { %2395 = vrcp.f32 %v1362_v13 }
 0x3f6   : > { %v1394_v10 = vpack.c.bf16 %v1387_v19, %v1386_v18  ;;  %v1652_v18 = vadd.s32 16, %v3162_v61 }
 0x3f8   : > { %2115 = vmatmul.msk.bf16.vlgmr.msra.gmra.mxu3 %vm1305_vm7, %v1394_v10  ;;  %v1725_v10 = vrot.slane %v1667_v15, 6  ;;  %vm1660_vm11 = vcmp.lt.s32.totalorder %v1652_v18, %v3081_v33 }
 0x3fb   : > { %v2396_v21 = vpop.eup %2395 }
 0x3fc   : > { %v1365_v20 = vpop.xlane.xlu2 %1364  ;;  %v1388_v25 = vmul.f32 %v2396_v21, %v2380_v56  ;;  %v1726_v21 = vsel %vm1682_vm10, %v1724_v62, %v1725_v10 }
 0x3fd   : > { %2397 = vrcp.f32 %v1365_v20 }
 0x403   : > { %v2398_v23 = vpop.eup %2397 }
 0x404   : > { %v1389_v26 = vmul.f32 %v2398_v23, %v2382_v52  ;;  %v1368_v39 = vpop.xlane.xlu0 %1367  ;;  %v1547_v23 = vpop.f32.mrf.mxu0 }
 0x405   : > { %2399 = vrcp.f32 %v1368_v39  ;;  %v1668_v39 = vsel %vm1660_vm11, 1.0, %v2667_v6 }
 0x406   : > { %v1395_v27 = vpack.c.bf16 %v1389_v26, %v1388_v25  ;;  %v2408_v25 = vld [vmem:[%s2918_s22 + $0x8] sm:$0xff] }
 0x408   : > { %2116 = vmatmul.msk.bf16.gmra.mxu3 %vm1305_vm7, %v1395_v27 }
 0x40b   : > { %v2400_v31 = vpop.eup %2399 }
 0x40c   : > { %v1371_v28 = vpop.xlane.xlu1 %1370  ;;  %v1390_v34 = vmul.f32 %v2400_v31, %v2384_v58  ;;  %v1727_v31 = vrot.slane %v1668_v39, 6 }
 0x40d   : > { %2401 = vrcp.f32 %v1371_v28 }
 0x413   : > { %v2402_v40 = vpop.eup %2401 }
 0x414   : > { %v1391_v35 = vmul.f32 %v2402_v40, %v2386_v1  ;;  %v1374_v48 = vpop.xlane.xlu2 %1373 }
 0x415   : > { %2403 = vrcp.f32 %v1374_v48  ;;  %v1669_v48 = vsel %vm1661_vm12, 1.0, %v2667_v6 }
 0x416   : > { %v1396_v36 = vpack.c.bf16 %v1391_v35, %v1390_v34  ;;  %v1728_v34 = vsel %vm1682_vm10, %v1725_v10, %v1727_v31  ;;  %v2409_v35 = vld [vmem:[%s2918_s22 + $0x10] sm:$0xff] }
 0x418   : > { %2117 = vmatmul.msk.bf16.gmra.mxu3 %vm1305_vm7, %v1396_v36 }
 0x41b   : > { %v2404_v51 = vpop.eup %2403 }
 0x41c   : > { %v1377_v49 = vpop.xlane.xlu0 %1376  ;;  %v1392_v60 = vmul.f32 %v2404_v51, %v2388_v8  ;;  %v1654_v51 = vadd.s32 32, %v3162_v61 }
 0x41d   : > { %2405 = vrcp.f32 %v1377_v49 }
 0x41e   : > { %vm1662_vm13 = vcmp.lt.s32.totalorder %v1654_v51, %v3081_v33 }
 0x423   : > { %v2406_v22 = vpop.eup %2405 }
 0x424   : > { %v1393_v3 = vmul.f32 %v2406_v22, %v2390_v11  ;;  %v2407_v11 = vld [vmem:[%s2918_s22] sm:$0xff]  ;;  %v1550_v22 = vpop.f32.mrf.mxu0 }
 0x426   : > { %v1397_v5 = vpack.c.bf16 %v1393_v3, %v1392_v60 }
 0x428   : > { %2118 = vmatmul.msk.bf16.gmra.mxu3 %vm1305_vm7, %v1397_v5  ;;  %v1729_v5 = vrot.slane %v1669_v48, 6 }
 0x42a   : > { %v1730_v45 = vsel %vm1682_vm10, %v1727_v31, %v1729_v5 }
 0x47b   : > { %v1423_v42 = vpop.f32.mrf.mxu3 }
 0x483   : > { %v1425_v56 = vpop.f32.mrf.mxu3 }
 0x484   : > { %v1443_v43 = vpack.c.bf16 %v1425_v56, %v1423_v42  ;;  %v2410_v42 = vld [vmem:[%s2918_s22 + $0x18] sm:$0xff] }
 0x486   : > { %1616 = vmatmul.bf16.vlgmr.msra.gmra.mxu1 %v1443_v43 }
 0x48b   : > { %v1428_v44 = vpop.f32.mrf.mxu3 }
 0x493   : > { %v1430_v46 = vpop.f32.mrf.mxu3 }
 0x494   : > { %v1444_v50 = vpack.c.bf16 %v1430_v46, %v1428_v44  ;;  %v1670_v44 = vsel %vm1662_vm13, 1.0, %v2667_v6 }
 0x496   : > { %1621 = vmatmul.bf16.gmra.mxu1 %v1444_v50  ;;  %v1655_v50 = vadd.s32 40, %v3162_v61 }
 0x498   : > { %vm1663_vm14 = vcmp.lt.s32.totalorder %v1655_v50, %v3081_v33 }
 0x499   : > { %v1671_v2 = vsel %vm1663_vm14, 1.0, %v2667_v6 }
 0x49b   : > { %v1433_v52 = vpop.f32.mrf.mxu3 }
 0x4a3   : > { %v1435_v53 = vpop.f32.mrf.mxu3 }
 0x4a4   : > { %v1445_v54 = vpack.c.bf16 %v1435_v53, %v1433_v52 }
 0x4a6   : > { %1626 = vmatmul.bf16.gmra.mxu1 %v1445_v54  ;;  %v1731_v54 = vrot.slane %v1670_v44, 6 }
 0x4ab   : > { %v1438_v57 = vpop.f32.mrf.mxu3 }
 0x4b3   : > { %v1440_v47 = vpop.f32.mrf.mxu3 }
 0x4b4   : > { %v1446_v58 = vpack.c.bf16 %v1440_v47, %v1438_v57  ;;  %v1552_v57 = vpop.f32.mrf.mxu0 }
 0x4b6   : > { %1631 = vmatmul.bf16.gmra.mxu1 %v1446_v58 }
 0x503   : > { %v1617_v1 = vpop.f32.mrf.mxu1 }
 0x504   : > { %v1618_v55 = vadd.f32 %v1617_v1, %v1540_v59  ;;  %v1732_v59 = vsel %vm1682_vm10, %v1729_v5, %v1731_v54 }
 0x506   : > { %v1641_v30 = vadd.f32 %v3167_v0, %v1618_v55 }
 0x508   : > { %v1683_v8 = vrot.slane %v1641_v30, 6  ;;  %v1656_v30 = vadd.s32 48, %v3162_v61 }
 0x50a   : > { %v1707_v12 = vadd.f32 %v2407_v11, %v1683_v8  ;;  %vm1664_vm15 = vcmp.lt.s32.totalorder %v1656_v30, %v3081_v33 }
 0x50b   : > { %v1619_v4 = vpop.f32.mrf.mxu1 }
 0x50c   : > { %v1748_v16 = vmul.f32 %v1724_v62, %v1707_v12  ;;  %v1620_v17 = vadd.f32 %v1619_v4, %v1542_v63  ;;  %v2411_v63 = vld [vmem:[%s2918_s22 + $0x20] sm:$0xff]  ;;  %v1555_v12 = vpop.f32.mrf.mxu0 }
 0x50e   : > { %1757 = vst [vmem:[%s3180_s20 - $0x2] sm:$0xfc] %v1748_v16  ;;  %v1642_v19 = vadd.f32 %v3167_v0, %v1620_v17  ;;  %v2412_v16 = vld [vmem:[%s2918_s22 + $0x28] sm:$0xff] }
 0x510   : > { %v1684_v13 = vrot.slane %v1642_v19, 6  ;;  %v1672_v19 = vsel %vm1664_vm15, 1.0, %v2667_v6 }
 0x512   : > { %v1685_v20 = vsel %vm1682_vm10, %v1683_v8, %v1684_v13 }
 0x513   : > { %v1708_v26 = vadd.f32 %v2408_v25, %v1685_v20  ;;  %v1622_v27 = vpop.f32.mrf.mxu1 }
 0x514   : > { %v1623_v29 = vadd.f32 %v1622_v27, %v1545_v9  ;;  %v1733_v9 = vrot.slane %v1671_v2, 6  ;;  %v1557_v39 = vpop.f32.mrf.mxu0 }
 0x515   : > { %v1749_v28 = vmul.f32 %v1726_v21, %v1708_v26 }
 0x516   : > { %v1643_v37 = vadd.f32 %v3167_v0, %v1623_v29  ;;  %v1734_v15 = vsel %vm1682_vm10, %v1731_v54, %v1733_v9  ;;  %v2413_v29 = vld [vmem:[%s2918_s22 + $0x30] sm:$0xff] }
 0x517   : > { %1758 = vst [vmem:[%s3180_s20 + $0x6] sm:$0xff] %v1749_v28 }
 0x518   : > { %v1686_v38 = vrot.slane %v1643_v37, 6 }
 0x51a   : > { %v1687_v40 = vsel %vm1682_vm10, %v1684_v13, %v1686_v38  ;;  %v1657_v13 = vadd.s32 56, %v3162_v61 }
 0x51b   : > { %v1709_v36 = vadd.f32 %v2409_v35, %v1687_v40  ;;  %v1624_v14 = vpop.f32.mrf.mxu1 }
 0x51c   : > { %v1625_v49 = vadd.f32 %v1624_v14, %v1547_v23  ;;  %v1735_v23 = vrot.slane %v1672_v19, 6  ;;  %vm1665_vm0 = vcmp.lt.s32.totalorder %v1657_v13, %v3081_v33 }
 0x51d   : > { %v1750_v60 = vmul.f32 %v1728_v34, %v1709_v36  ;;  %v1673_v61 = vsel %vm1665_vm0, 1.0, %v2667_v6  ;;  %v2414_v6 = vld [vmem:[%s2918_s22 + $0x40] sm:$0xf] }
 0x51e   : > { %v1644_v3 = vadd.f32 %v3167_v0, %v1625_v49  ;;  %v1736_v27 = vsel %vm1682_vm10, %v1733_v9, %v1735_v23  ;;  %v1737_v40 = vrot.slane %v1673_v61, 6 }
 0x51f   : > { %1759 = vst [vmem:[%s3180_s20 + $0xe] sm:$0xff] %v1750_v60 }
 0x520   : > { %v1688_v41 = vrot.slane %v1644_v3, 6  ;;  %v1738_v36 = vsel %vm1682_vm10, %v1735_v23, %v1737_v40 }
 0x522   : > { %v1689_v24 = vsel %vm1682_vm10, %v1686_v38, %v1688_v41 }
 0x523   : > { %v1710_v56 = vadd.f32 %v2410_v42, %v1689_v24  ;;  %v1627_v43 = vpop.f32.mrf.mxu1 }
 0x524   : > { %v1628_v46 = vadd.f32 %v1627_v43, %v1550_v22 }
 0x525   : > { %v1751_v52 = vmul.f32 %v1730_v45, %v1710_v56 }
 0x526   : > { %v1645_v53 = vadd.f32 %v3167_v0, %v1628_v46 }
 0x527   : > { %1760 = vst [vmem:[%s3180_s20 + $0x16] sm:$0xff] %v1751_v52 }
 0x528   : > { %v1690_v47 = vrot.slane %v1645_v53, 6 }
 0x52a   : > { %v1691_v58 = vsel %vm1682_vm10, %v1688_v41, %v1690_v47 }
 0x52b   : > { %v1711_v1 = vadd.f32 %v2411_v63, %v1691_v58  ;;  %v1629_v55 = vpop.f32.mrf.mxu1 }
 0x52c   : > { %v1630_v7 = vadd.f32 %v1629_v55, %v1552_v57 }
 0x52d   : > { %v1752_v8 = vmul.f32 %v1732_v59, %v1711_v1 }
 0x52e   : > { %v1646_v62 = vadd.f32 %v3167_v0, %v1630_v7 }
 0x52f   : > { %1761 = vst [vmem:[%s3180_s20 + $0x1e] sm:$0xff] %v1752_v8 }
 0x530   : > { %v1692_v11 = vrot.slane %v1646_v62, 6 }
 0x532   : > { %v1693_v4 = vsel %vm1682_vm10, %v1690_v47, %v1692_v11 }
 0x533   : > { %v1712_v17 = vadd.f32 %v2412_v16, %v1693_v4  ;;  %v1632_v18 = vpop.f32.mrf.mxu1 }
 0x534   : > { %v1633_v10 = vadd.f32 %v1632_v18, %v1555_v12 }
 0x535   : > { %v1753_v20 = vmul.f32 %v1734_v15, %v1712_v17 }
 0x536   : > { %v1647_v21 = vadd.f32 %v3167_v0, %v1633_v10 }
 0x537   : > { %1762 = vst [vmem:[%s3180_s20 + $0x26] sm:$0xff] %v1753_v20 }
 0x538   : > { %v1694_v25 = vrot.slane %v1647_v21, 6 }
 0x53a   : > { %v1695_v26 = vsel %vm1682_vm10, %v1692_v11, %v1694_v25 }
 0x53b   : > { %v1713_v32 = vadd.f32 %v2413_v29, %v1695_v26  ;;  %v1634_v28 = vpop.f32.mrf.mxu1 }
 0x53c   : > { %v1635_v37 = vadd.f32 %v1634_v28, %v1557_v39 }
 0x53d   : > { %v1754_v31 = vmul.f32 %v1736_v27, %v1713_v32 }
 0x53e   : > { %v1648_v38 = vadd.f32 %v3167_v0, %v1635_v37  ;;  %v2415_v0 = vld [vmem:[%s2918_s22 + $0x38] sm:$0xff] }
 0x53f   : > { %1763 = vst [vmem:[%s3180_s20 + $0x2e] sm:$0xff] %v1754_v31 }
 0x540   : > { %v1696_v33 = vrot.slane %v1648_v38, 6 }
 0x542   : > { %v1697_v34 = vsel %vm1682_vm10, %v1694_v25, %v1696_v33  ;;  %v1715_v35 = vadd.f32 %v2414_v6, %v1696_v33 }
 0x543   : > { %v1714_v14 = vadd.f32 %v2415_v0, %v1697_v34 }
 0x544   : > { %v1756_v48 = vmul.f32 %v1737_v40, %v1715_v35 }
 0x545   : > { %v1755_v49 = vmul.f32 %v1738_v36, %v1714_v14 }
 0x546   : > { %1765 = vst [vmem:[%s3180_s20 + $0x3e] sm:$0x3] %v1756_v48 }
 0x547   : > { %1764 = vst [vmem:[%s3180_s20 + $0x36] sm:$0xff] %v1755_v49 }
 0x548   : > { %2605 = shalt.err (!%p2602_p12)
}
 0x549   : > { %s2668_s19 = smov 128   ;;  %s2669_s20 = smov 8  }
 0x54a   : > { %2289 = dma.vmem_to_hbm [thread:$0]  (%p2830_p3), %s1780_s8, 1024, %s1782_s17, %s1767_s0, %s2668_s19, %s2668_s19, %s2669_s20  }
 0x54b PF: > { %s3307_s10 = sld [smem:[#allocation19_spill]]  ;;  %p3309_p13 = scmp.ge.s32.totalorder %s2654_s15, 2 }
 0x54d   : > { %p2309_p0 = pnand %p3309_p13, %p2778_p6 }
 0x54f   : > { %p2310_p5 = pneg %p2309_p0 }
 0x551   : > { %s1796_s6 = sand.u32 1, %s3307_s10  }
 0x552   : > { %s1797_s11 = scalar_lea.sflag [#allocation6], %s1796_s6 }
 0x553   : > { %2637 = dma.done.wait (%p2310_p5), %s1797_s11, 1024  }
 0x554   : > { %2639 = vsyncadd (%p2310_p5), %s1797_s11, 4294966272  ;;  %s3310_s18 = smov %s2836_s29  ;;  %p36_p7 = scmp.ge.s32.totalorder %s2820_s28, 4  }
 0x555   : > { %s3311_s29 = smov %s2646_s30  ;;  %s3312_s30 = smov %s2650_s14 }
 0x556   : > { %s3313_s14 = smov %s3310_s18  ;;  %s3314_s15 = smov %s2820_s28 }
 0x557   :  { %38 = sbr.rel (!%p36_p7) target bundleno = 16 (0x10), region = 132 }
 0x55c   :  { %1803 = vsyncpa [#allocation5], 1 }
 0x55d   :  { %1805 = vsyncpa [#allocation5 + $0x1], 1 }
 0x55e   :  { %1806 = vsyncpa [#allocation8], 1 }
 0x55f   :  { %1807 = vsyncpa [#allocation11], 1 }
 0x560   :  { %1808 = vsyncpa [#allocation6], 1 }
 0x561   :  { %1810 = vsyncpa [#allocation6 + $0x1], 1 }

</bundles_post_ra>
